<compile_context>
chip_gen: v7x
topology: tpu7x:2x2x1
jax: 0.10.0
libtpu: 0.0.40
codegen_flags: <defaults>
</compile_context>

<pallas_src>
import math
import functools

import jax
import jax.numpy as jnp
import numpy as np
from jax.experimental import pallas as pl
from jax.experimental.pallas import tpu as pltpu


# ----------------------------- Pallas kernel ------------------------------ #

def _layernorm(v, w, b, eps=1e-5):
    mu = jnp.mean(v, axis=-1, keepdims=True)
    var = jnp.mean((v - mu) ** 2, axis=-1, keepdims=True)
    return (v - mu) * jax.lax.rsqrt(var + eps) * w + b


def transformer_kernel(x_ref,
                       ln1w_ref, ln1b_ref,
                       wqkv_ref, bqkv_ref, wo_ref, bo_ref,
                       ln2w_ref, ln2b_ref,
                       wfc_ref, bfc_ref, wproj_ref, bproj_ref,
                       o_ref,
                       resid_ref, attn_ref,
                       *, n_head, head_dim, n_batch, seq_len, bf16_gelu):
    """One layer step on one row tile of NB fused sequences: x_ref is (NB*L, E)."""
    E = n_head * head_dim
    layer = pl.program_id(1)

    # First layer of this row tile: load the f32 residual stream into VMEM scratch.
    @pl.when(layer == 0)
    def _():
        resid_ref[...] = x_ref[...].astype(jnp.float32)

    x = resid_ref[...]                                       # (M, E) f32, M = NB*L

    # ---- attention branch: x + out_proj(MHA(ln_1(x))) ----
    h = _layernorm(x, ln1w_ref[...], ln1b_ref[...])
    # Fused QKV projection (M, E) @ (E, 3E): bf16 MXU operands, f32 accumulation.
    qkv = jnp.dot(h.astype(jnp.bfloat16), wqkv_ref[...],
                  preferred_element_type=jnp.float32) + bqkv_ref[...]   # (M, 3E)
    # 1/sqrt(head_dim) is pre-folded into the Q columns of wqkv/bqkv.
    q = qkv[:, :E].astype(jnp.bfloat16)
    k = qkv[:, E:2 * E].astype(jnp.bfloat16)
    v = qkv[:, 2 * E:].astype(jnp.bfloat16)

    # Per-(sequence, head) attention core.  Each head output is written straight
    # into the attn_ref VMEM scratch, ending its live range immediately.
    for b in range(n_batch):                                 # static unroll
        rs = b * seq_len
        for hd in range(n_head):
            lo = hd * head_dim
            qh = q[rs:rs + seq_len, lo:lo + head_dim]        # (L, Dh) bf16
            kh = k[rs:rs + seq_len, lo:lo + head_dim]
            vh = v[rs:rs + seq_len, lo:lo + head_dim]
            # q @ k^T without materialising a transpose (contract last dims).
            s = jax.lax.dot_general(qh, kh, (((1,), (1,)), ((), ())),
                                    preferred_element_type=jnp.float32)  # (L, L)
            s = s - jnp.max(s, axis=-1, keepdims=True)
            p = jnp.exp(s)
            p = p * pl.reciprocal(jnp.sum(p, axis=-1, keepdims=True), approx=True)
            attn_ref[rs:rs + seq_len, lo:lo + head_dim] = jnp.dot(
                p.astype(jnp.bfloat16), vh, preferred_element_type=jnp.float32)

    attn = jnp.dot(attn_ref[...].astype(jnp.bfloat16), wo_ref[...],
                   preferred_element_type=jnp.float32) + bo_ref[...]     # (M, E)
    x = x + attn

    # ---- MLP branch: x + c_proj(QuickGELU(c_fc(ln_2(x)))) ----
    h2 = _layernorm(x, ln2w_ref[...], ln2b_ref[...])
    ff = jnp.dot(h2.astype(jnp.bfloat16), wfc_ref[...],
                 preferred_element_type=jnp.float32) + bfc_ref[...]      # (M, 4E)
    if bf16_gelu:
        # It feeds a bf16 matmul anyway; bf16 halves VPU/EUP pressure on v6e/v7x.
        ffa = ff.astype(jnp.bfloat16)
        ffa = ffa * jax.nn.sigmoid(1.702 * ffa)
    else:
        ffa = (ff * jax.nn.sigmoid(1.702 * ff)).astype(jnp.bfloat16)
    ff2 = jnp.dot(ffa, wproj_ref[...],
                  preferred_element_type=jnp.float32) + bproj_ref[...]   # (M, E)
    x = x + ff2

    resid_ref[...] = x                                       # carry to next layer

    @pl.when(layer == pl.num_programs(1) - 1)
    def _():
        o_ref[...] = x.astype(o_ref.dtype)


# --------------------------- one-time weight prep --------------------------- #

_PARAM_ORDER = ("ln1w", "ln1b", "wqkv", "bqkv", "wo", "bo",
                "ln2w", "ln2b", "wfc", "bfc", "wproj", "bproj")


def prepare_params(params, n_head):
    """One-time (outside jit) prep: transpose, bf16 cast, bias reshape, per-layer
    stacking, and folding 1/sqrt(head_dim) into the Q projection."""
    E = params[0]["ln1_w"].shape[0]
    head_dim = E // n_head
    scale = 1.0 / math.sqrt(head_dim)
    wdt = jnp.bfloat16

    def stack(fn):
        return jnp.stack([fn(p) for p in params], axis=0)

    wqkv = stack(lambda p: p["in_proj_w"].T)                    # (Ly, E, 3E) f32
    bqkv = stack(lambda p: p["in_proj_b"].reshape(1, 3 * E))    # (Ly, 1, 3E) f32
    wqkv = wqkv.at[:, :, :E].multiply(scale)                    # fold q-scale
    bqkv = bqkv.at[:, :, :E].multiply(scale)

    prepared = dict(
        ln1w=stack(lambda p: p["ln1_w"].reshape(1, E)),
        ln1b=stack(lambda p: p["ln1_b"].reshape(1, E)),
        wqkv=wqkv.astype(wdt),
        bqkv=bqkv,
        wo=stack(lambda p: p["out_proj_w"].T).astype(wdt),      # (Ly, E, E)
        bo=stack(lambda p: p["out_proj_b"].reshape(1, E)),
        ln2w=stack(lambda p: p["ln2_w"].reshape(1, E)),
        ln2b=stack(lambda p: p["ln2_b"].reshape(1, E)),
        wfc=stack(lambda p: p["fc_w"].T).astype(wdt),           # (Ly, E, 4E)
        bfc=stack(lambda p: p["fc_b"].reshape(1, 4 * E)),
        wproj=stack(lambda p: p["proj_w"].T).astype(wdt),       # (Ly, 4E, E)
        bproj=stack(lambda p: p["proj_b"].reshape(1, E)),
    )
    return jax.tree_util.tree_map(jax.block_until_ready, prepared)


# ------------------------------- wrapper ----------------------------------- #

def _vmem_limit_bytes():
    cap = 64 << 20                         # conservative fallback (v7x per-TC VMEM)
    try:
        cap = int(getattr(pltpu.get_tpu_info(), "vmem_capacity_bytes", cap))
    except Exception:
        pass
    return int(0.8 * cap)


def _choose_row_batch(n, seq_len, target_rows=256, min_tiles=2):
    """Pick NB sequences per row tile: fill the MXU (NB*L >= target_rows) while
    keeping >= min_tiles parallel grid steps (v7x has 2 TensorCores)."""
    divisors = [d for d in range(1, n + 1) if n % d == 0]
    cands = [d for d in divisors if n // d >= min_tiles] or divisors
    for d in cands:
        if d * seq_len >= target_rows:
            return d
    return cands[-1]


def transformer_pallas(x_nle, prepared, n_head, *, bf16_gelu=True):
    """x_nle: (N, L, E). Runs all layers in one pallas_call. Returns (N, L, E)."""
    N, L, E = x_nle.shape
    layers = prepared["wqkv"].shape[0]
    assert E % n_head == 0
    head_dim = E // n_head

    nb = _choose_row_batch(N, L)
    rtiles = N // nb
    M = nb * L
    x_r = x_nle.reshape(rtiles, M, E)       # free metadata reshape

    x_map = lambda r, l: (r, 0, 0)          # row tile block; constant across layers
    w_map = lambda r, l: (l, 0, 0)          # per-layer weight block

    in_specs = [pl.BlockSpec((None, M, E), x_map)]
    args = [x_r]
    for name in _PARAM_ORDER:
        a = prepared[name]
        in_specs.append(pl.BlockSpec((None,) + a.shape[1:], w_map))
        args.append(a)

    kernel = functools.partial(
        transformer_kernel, n_head=n_head, head_dim=head_dim,
        n_batch=nb, seq_len=L, bf16_gelu=bf16_gelu)

    out = pl.pallas_call(
        kernel,
        out_shape=jax.ShapeDtypeStruct((rtiles, M, E), x_nle.dtype),
        grid=(rtiles, layers),
        in_specs=in_specs,
        out_specs=pl.BlockSpec((None, M, E), x_map),
        scratch_shapes=[pltpu.VMEM((M, E), jnp.float32),    # residual stream
                        pltpu.VMEM((M, E), jnp.float32)],   # attention head outputs
        compiler_params=pltpu.CompilerParams(
            dimension_semantics=("parallel", "arbitrary"),
            vmem_limit_bytes=_vmem_limit_bytes()),
    )(*args)
    return out.reshape(N, L, E)


@functools.partial(jax.jit, static_argnums=(2,))
def transformer_forward(x_lne, prepared, n_head):
    """PyTorch-layout entry point: x_lne is (L, N, E); returns (L, N, E)."""
    x = jnp.transpose(x_lne, (1, 0, 2))     # (N, L, E)
    x = transformer_pallas(x, prepared, n_head)
    return jnp.transpose(x, (1, 0, 2))      # back to (L, N, E)


# --------------------------- parameter creation ---------------------------- #

def init_params(key, width, layers):
    params = []
    for l in range(layers):
        ks = jax.random.split(jax.random.fold_in(key, l), 10)
        E = width
        params.append(dict(
            in_proj_w=0.02 * jax.random.normal(ks[0], (3 * E, E), jnp.float32),
            in_proj_b=0.02 * jax.random.normal(ks[1], (3 * E,), jnp.float32),
            out_proj_w=0.02 * jax.random.normal(ks[2], (E, E), jnp.float32),
            out_proj_b=0.02 * jax.random.normal(ks[3], (E,), jnp.float32),
            ln1_w=1.0 + 0.02 * jax.random.normal(ks[4], (E,), jnp.float32),
            ln1_b=0.02 * jax.random.normal(ks[5], (E,), jnp.float32),
            ln2_w=1.0 + 0.02 * jax.random.normal(ks[6], (E,), jnp.float32),
            ln2_b=0.02 * jax.random.normal(ks[7], (E,), jnp.float32),
            fc_w=0.02 * jax.random.normal(ks[8], (4 * E, E), jnp.float32),
            fc_b=jnp.zeros((4 * E,), jnp.float32),
            proj_w=0.02 * jax.random.normal(ks[9], (E, 4 * E), jnp.float32),
            proj_b=jnp.zeros((E,), jnp.float32),
        ))
    return params


# ------------------------- pure-JAX reference model ------------------------ #

def ref_layernorm(x, w, b, eps=1e-5):
    mu = jnp.mean(x, axis=-1, keepdims=True)
    var = jnp.mean((x - mu) ** 2, axis=-1, keepdims=True)
    return (x - mu) / jnp.sqrt(var + eps) * w + b


def ref_block(x, p, n_head):
    N, L, E = x.shape
    Dh = E // n_head
    h = ref_layernorm(x, p["ln1_w"], p["ln1_b"])
    qkv = h @ p["in_proj_w"].T + p["in_proj_b"]
    q, k, v = qkv[..., :E], qkv[..., E:2 * E], qkv[..., 2 * E:]
    q = q.reshape(N, L, n_head, Dh) / math.sqrt(Dh)
    k = k.reshape(N, L, n_head, Dh)
    v = v.reshape(N, L, n_head, Dh)
    s = jnp.einsum("nqhd,nkhd->nhqk", q, k)
    pattn = jax.nn.softmax(s, axis=-1)
    o = jnp.einsum("nhqk,nkhd->nqhd", pattn, v).reshape(N, L, E)
    o = o @ p["out_proj_w"].T + p["out_proj_b"]
    x = x + o
    h2 = ref_layernorm(x, p["ln2_w"], p["ln2_b"])
    ff = h2 @ p["fc_w"].T + p["fc_b"]
    ff = ff * jax.nn.sigmoid(1.702 * ff)
    ff = ff @ p["proj_w"].T + p["proj_b"]
    return x + ff


def ref_transformer(x_lne, params, n_head):
    x = jnp.transpose(x_lne, (1, 0, 2))
    for p in params:
        x = ref_block(x, p, n_head)
    return jnp.transpose(x, (1, 0, 2))


# ----------------------------------- main ---------------------------------- #

if __name__ == "__main__":
    # Small but lane-friendly shapes: E multiple of 128, head_dim = 64,
    # N=4 so the kernel exercises row batching (NB=2) with 2 parallel row tiles.
    L, N, E = 16, 4, 128        # seq, batch, width
    HEADS, LAYERS = 2, 2

    key = jax.random.PRNGKey(0)
    kx, kp = jax.random.split(key)
    x = jax.random.normal(kx, (L, N, E), jnp.float32)   # (L, N, E) — PyTorch layout
    params = init_params(kp, E, LAYERS)

    prepared = prepare_params(params, HEADS)            # one-time, outside jit

    out = jax.block_until_ready(transformer_forward(x, prepared, HEADS))

    ref = jax.block_until_ready(ref_transformer(x, params, HEADS))
    # bf16 MXU operands / bf16 QuickGELU vs. an all-f32 reference -> bf16 tolerance.
    np.testing.assert_allclose(np.asarray(out), np.asarray(ref), rtol=2e-2, atol=2e-2)

    assert out.shape == (L, N, E)
    print("KERNEL_OK")
</pallas_src>

<mosaic_0001>
module attributes {stable_mosaic.version = 11 : i64} {
  func.func @transformer_kernel(%arg0: i32, %arg1: i32, %arg2: memref<1x32x128xf32, #tpu.memory_space<vmem>>, %arg3: memref<1x1x128xf32, #tpu.memory_space<vmem>>, %arg4: memref<1x1x128xf32, #tpu.memory_space<vmem>>, %arg5: memref<1x128x384xbf16, #tpu.memory_space<vmem>>, %arg6: memref<1x1x384xf32, #tpu.memory_space<vmem>>, %arg7: memref<1x128x128xbf16, #tpu.memory_space<vmem>>, %arg8: memref<1x1x128xf32, #tpu.memory_space<vmem>>, %arg9: memref<1x1x128xf32, #tpu.memory_space<vmem>>, %arg10: memref<1x1x128xf32, #tpu.memory_space<vmem>>, %arg11: memref<1x128x512xbf16, #tpu.memory_space<vmem>>, %arg12: memref<1x1x512xf32, #tpu.memory_space<vmem>>, %arg13: memref<1x512x128xbf16, #tpu.memory_space<vmem>>, %arg14: memref<1x1x128xf32, #tpu.memory_space<vmem>>, %arg15: memref<1x32x128xf32, #tpu.memory_space<vmem>>, %arg16: memref<32x128xf32, #tpu.memory_space<vmem>>, %arg17: memref<32x128xf32, #tpu.memory_space<vmem>>) attributes {dimension_semantics = [#tpu.dimension_semantics<parallel>, #tpu.dimension_semantics<arbitrary>], iteration_bounds = array<i64: 2, 2>, scalar_prefetch = 0 : i64, scratch_operands = 2 : i64, tpu.core_type = #tpu.core_type<tc>, window_params = [{transform_indices = @transform_0, window_bounds = array<i64: 1, 32, 128>}, {transform_indices = @transform_1, window_bounds = array<i64: 1, 1, 128>}, {transform_indices = @transform_2, window_bounds = array<i64: 1, 1, 128>}, {transform_indices = @transform_3, window_bounds = array<i64: 1, 128, 384>}, {transform_indices = @transform_4, window_bounds = array<i64: 1, 1, 384>}, {transform_indices = @transform_5, window_bounds = array<i64: 1, 128, 128>}, {transform_indices = @transform_6, window_bounds = array<i64: 1, 1, 128>}, {transform_indices = @transform_7, window_bounds = array<i64: 1, 1, 128>}, {transform_indices = @transform_8, window_bounds = array<i64: 1, 1, 128>}, {transform_indices = @transform_9, window_bounds = array<i64: 1, 128, 512>}, {transform_indices = @transform_10, window_bounds = array<i64: 1, 1, 512>}, {transform_indices = @transform_11, window_bounds = array<i64: 1, 512, 128>}, {transform_indices = @transform_12, window_bounds = array<i64: 1, 1, 128>}, {transform_indices = @transform_13, window_bounds = array<i64: 1, 32, 128>}]} {
    %c0_i32 = arith.constant 0 : i32
    %0 = arith.cmpi eq, %arg1, %c0_i32 : i32
    %1 = arith.extui %0 : i1 to i32
    %c0_i32_0 = arith.constant 0 : i32
    %2 = arith.cmpi ne, %1, %c0_i32_0 : i32
    scf.if %2 {
      %c0_80 = arith.constant 0 : index
      %c0_81 = arith.constant 0 : index
      %c0_82 = arith.constant 0 : index
      %177 = vector.load %arg2[%c0_80, %c0_81, %c0_82] : memref<1x32x128xf32, #tpu.memory_space<vmem>>, vector<1x32x128xf32>
      %178 = vector.shape_cast %177 : vector<1x32x128xf32> to vector<32x128xf32>
      %c0_83 = arith.constant 0 : index
      %c0_84 = arith.constant 0 : index
      %179 = vector.load %arg16[%c0_83, %c0_84] : memref<32x128xf32, #tpu.memory_space<vmem>>, vector<32x128xf32>
      tpu.vector_store %arg16[%c0_83, %c0_84], %178 {strides = array<i32>} : memref<32x128xf32, #tpu.memory_space<vmem>>, vector<32x128xf32>,
    } else {
    }
    %c0 = arith.constant 0 : index
    %c0_1 = arith.constant 0 : index
    %3 = vector.load %arg16[%c0, %c0_1] : memref<32x128xf32, #tpu.memory_space<vmem>>, vector<32x128xf32>
    %c0_2 = arith.constant 0 : index
    %c0_3 = arith.constant 0 : index
    %c0_4 = arith.constant 0 : index
    %4 = vector.load %arg3[%c0_2, %c0_3, %c0_4] : memref<1x1x128xf32, #tpu.memory_space<vmem>>, vector<1x1x128xf32>
    %5 = vector.shape_cast %4 : vector<1x1x128xf32> to vector<1x128xf32>
    %c0_5 = arith.constant 0 : index
    %c0_6 = arith.constant 0 : index
    %c0_7 = arith.constant 0 : index
    %6 = vector.load %arg4[%c0_5, %c0_6, %c0_7] : memref<1x1x128xf32, #tpu.memory_space<vmem>>, vector<1x1x128xf32>
    %7 = vector.shape_cast %6 : vector<1x1x128xf32> to vector<1x128xf32>
    %cst = arith.constant dense<0.000000e+00> : vector<32xf32>
    %8 = vector.multi_reduction <add>, %3, %cst [1] : vector<32x128xf32> to vector<32xf32>
    %9 = vector.shape_cast %8 : vector<32xf32> to vector<32x1xf32>
    %cst_8 = arith.constant 1.280000e+02 : f32
    %10 = vector.broadcast %cst_8 : f32 to vector<32x1xf32>
    %11 = arith.divf %9, %10 : vector<32x1xf32>
    %12 = vector.broadcast %11 : vector<32x1xf32> to vector<32x128xf32>
    %13 = arith.subf %3, %12 : vector<32x128xf32>
    %14 = arith.mulf %13, %13 : vector<32x128xf32>
    %cst_9 = arith.constant dense<0.000000e+00> : vector<32xf32>
    %15 = vector.multi_reduction <add>, %14, %cst_9 [1] : vector<32x128xf32> to vector<32xf32>
    %16 = vector.shape_cast %15 : vector<32xf32> to vector<32x1xf32>
    %cst_10 = arith.constant 1.280000e+02 : f32
    %17 = vector.broadcast %cst_10 : f32 to vector<32x1xf32>
    %18 = arith.divf %16, %17 : vector<32x1xf32>
    %19 = vector.broadcast %11 : vector<32x1xf32> to vector<32x128xf32>
    %20 = arith.subf %3, %19 : vector<32x128xf32>
    %cst_11 = arith.constant 9.99999974E-6 : f32
    %21 = vector.broadcast %cst_11 : f32 to vector<32x1xf32>
    %22 = arith.addf %18, %21 : vector<32x1xf32>
    %23 = math.rsqrt %22 : vector<32x1xf32>
    %24 = vector.broadcast %23 : vector<32x1xf32> to vector<32x128xf32>
    %25 = arith.mulf %20, %24 : vector<32x128xf32>
    %26 = vector.broadcast %5 : vector<1x128xf32> to vector<32x128xf32>
    %27 = arith.mulf %25, %26 : vector<32x128xf32>
    %28 = vector.broadcast %7 : vector<1x128xf32> to vector<32x128xf32>
    %29 = arith.addf %27, %28 : vector<32x128xf32>
    %30 = arith.truncf %29 : vector<32x128xf32> to vector<32x128xbf16>
    %c0_12 = arith.constant 0 : index
    %c0_13 = arith.constant 0 : index
    %c0_14 = arith.constant 0 : index
    %31 = vector.load %arg5[%c0_12, %c0_13, %c0_14] : memref<1x128x384xbf16, #tpu.memory_space<vmem>>, vector<1x128x384xbf16>
    %32 = vector.shape_cast %31 : vector<1x128x384xbf16> to vector<128x384xbf16>
    %cst_15 = arith.constant dense<0.000000e+00> : vector<32x384xf32>
    %33 = tpu.matmul %30, %32, %cst_15 {dimension_numbers = #tpu.dot_dimension_numbers<[1], [0], [0], [1], [0, 0, 1, 1], [], []>} : vector<32x128xbf16>, vector<128x384xbf16>, vector<32x384xf32> -> vector<32x384xf32>
    %c0_16 = arith.constant 0 : index
    %c0_17 = arith.constant 0 : index
    %c0_18 = arith.constant 0 : index
    %34 = vector.load %arg6[%c0_16, %c0_17, %c0_18] : memref<1x1x384xf32, #tpu.memory_space<vmem>>, vector<1x1x384xf32>
    %35 = vector.shape_cast %34 : vector<1x1x384xf32> to vector<1x384xf32>
    %36 = vector.broadcast %35 : vector<1x384xf32> to vector<32x384xf32>
    %37 = arith.addf %33, %36 : vector<32x384xf32>
    %38 = vector.extract_strided_slice %37 {offsets = [0, 0], sizes = [32, 128], strides = [1, 1]} : vector<32x384xf32> to vector<32x128xf32>
    %39 = arith.truncf %38 : vector<32x128xf32> to vector<32x128xbf16>
    %40 = vector.extract_strided_slice %37 {offsets = [0, 128], sizes = [32, 128], strides = [1, 1]} : vector<32x384xf32> to vector<32x128xf32>
    %41 = arith.truncf %40 : vector<32x128xf32> to vector<32x128xbf16>
    %42 = vector.extract_strided_slice %37 {offsets = [0, 256], sizes = [32, 128], strides = [1, 1]} : vector<32x384xf32> to vector<32x128xf32>
    %43 = arith.truncf %42 : vector<32x128xf32> to vector<32x128xbf16>
    %44 = vector.extract_strided_slice %39 {offsets = [0, 0], sizes = [16, 64], strides = [1, 1]} : vector<32x128xbf16> to vector<16x64xbf16>
    %45 = vector.extract_strided_slice %41 {offsets = [0, 0], sizes = [16, 64], strides = [1, 1]} : vector<32x128xbf16> to vector<16x64xbf16>
    %46 = vector.extract_strided_slice %43 {offsets = [0, 0], sizes = [16, 64], strides = [1, 1]} : vector<32x128xbf16> to vector<16x64xbf16>
    %cst_19 = arith.constant dense<0.000000e+00> : vector<16x16xf32>
    %47 = tpu.matmul %44, %45, %cst_19 {dimension_numbers = #tpu.dot_dimension_numbers<[1], [1], [0], [0], [0, 0, 1, 0], [], []>} : vector<16x64xbf16>, vector<16x64xbf16>, vector<16x16xf32> -> vector<16x16xf32>
    %cst_20 = arith.constant dense<0xFF800000> : vector<16xf32>
    %48 = vector.multi_reduction <maximumf>, %47, %cst_20 [1] : vector<16x16xf32> to vector<16xf32>
    %49 = vector.shape_cast %48 : vector<16xf32> to vector<16x1xf32>
    %50 = vector.broadcast %49 : vector<16x1xf32> to vector<16x16xf32>
    %51 = arith.subf %47, %50 : vector<16x16xf32>
    %52 = math.exp %51 : vector<16x16xf32>
    %cst_21 = arith.constant dense<0.000000e+00> : vector<16xf32>
    %53 = vector.multi_reduction <add>, %52, %cst_21 [1] : vector<16x16xf32> to vector<16xf32>
    %54 = vector.shape_cast %53 : vector<16xf32> to vector<16x1xf32>
    %55 = tpu.reciprocal %54 {approx = true} : vector<16x1xf32> -> vector<16x1xf32>
    %56 = vector.broadcast %55 : vector<16x1xf32> to vector<16x16xf32>
    %57 = arith.mulf %52, %56 : vector<16x16xf32>
    %58 = arith.truncf %57 : vector<16x16xf32> to vector<16x16xbf16>
    %cst_22 = arith.constant dense<0.000000e+00> : vector<16x64xf32>
    %59 = tpu.matmul %58, %46, %cst_22 {dimension_numbers = #tpu.dot_dimension_numbers<[1], [0], [0], [1], [0, 0, 1, 1], [], []>} : vector<16x16xbf16>, vector<16x64xbf16>, vector<16x64xf32> -> vector<16x64xf32>
    %c0_23 = arith.constant 0 : index
    %c0_24 = arith.constant 0 : index
    %60 = vector.load %arg17[%c0_23, %c0_24] : memref<32x128xf32, #tpu.memory_space<vmem>>, vector<16x64xf32>
    tpu.vector_store %arg17[%c0_23, %c0_24], %59 {strides = array<i32>} : memref<32x128xf32, #tpu.memory_space<vmem>>, vector<16x64xf32>,
    %61 = vector.extract_strided_slice %39 {offsets = [0, 64], sizes = [16, 64], strides = [1, 1]} : vector<32x128xbf16> to vector<16x64xbf16>
    %62 = vector.extract_strided_slice %41 {offsets = [0, 64], sizes = [16, 64], strides = [1, 1]} : vector<32x128xbf16> to vector<16x64xbf16>
    %63 = vector.extract_strided_slice %43 {offsets = [0, 64], sizes = [16, 64], strides = [1, 1]} : vector<32x128xbf16> to vector<16x64xbf16>
    %cst_25 = arith.constant dense<0.000000e+00> : vector<16x16xf32>
    %64 = tpu.matmul %61, %62, %cst_25 {dimension_numbers = #tpu.dot_dimension_numbers<[1], [1], [0], [0], [0, 0, 1, 0], [], []>} : vector<16x64xbf16>, vector<16x64xbf16>, vector<16x16xf32> -> vector<16x16xf32>
    %cst_26 = arith.constant dense<0xFF800000> : vector<16xf32>
    %65 = vector.multi_reduction <maximumf>, %64, %cst_26 [1] : vector<16x16xf32> to vector<16xf32>
    %66 = vector.shape_cast %65 : vector<16xf32> to vector<16x1xf32>
    %67 = vector.broadcast %66 : vector<16x1xf32> to vector<16x16xf32>
    %68 = arith.subf %64, %67 : vector<16x16xf32>
    %69 = math.exp %68 : vector<16x16xf32>
    %cst_27 = arith.constant dense<0.000000e+00> : vector<16xf32>
    %70 = vector.multi_reduction <add>, %69, %cst_27 [1] : vector<16x16xf32> to vector<16xf32>
    %71 = vector.shape_cast %70 : vector<16xf32> to vector<16x1xf32>
    %72 = tpu.reciprocal %71 {approx = true} : vector<16x1xf32> -> vector<16x1xf32>
    %73 = vector.broadcast %72 : vector<16x1xf32> to vector<16x16xf32>
    %74 = arith.mulf %69, %73 : vector<16x16xf32>
    %75 = arith.truncf %74 : vector<16x16xf32> to vector<16x16xbf16>
    %cst_28 = arith.constant dense<0.000000e+00> : vector<16x64xf32>
    %76 = tpu.matmul %75, %63, %cst_28 {dimension_numbers = #tpu.dot_dimension_numbers<[1], [0], [0], [1], [0, 0, 1, 1], [], []>} : vector<16x16xbf16>, vector<16x64xbf16>, vector<16x64xf32> -> vector<16x64xf32>
    %c0_29 = arith.constant 0 : index
    %c64 = arith.constant 64 : index
    %77 = vector.load %arg17[%c0_29, %c64] : memref<32x128xf32, #tpu.memory_space<vmem>>, vector<16x64xf32>
    tpu.vector_store %arg17[%c0_29, %c64], %76 {strides = array<i32>} : memref<32x128xf32, #tpu.memory_space<vmem>>, vector<16x64xf32>,
    %78 = vector.extract_strided_slice %39 {offsets = [16, 0], sizes = [16, 64], strides = [1, 1]} : vector<32x128xbf16> to vector<16x64xbf16>
    %79 = vector.extract_strided_slice %41 {offsets = [16, 0], sizes = [16, 64], strides = [1, 1]} : vector<32x128xbf16> to vector<16x64xbf16>
    %80 = vector.extract_strided_slice %43 {offsets = [16, 0], sizes = [16, 64], strides = [1, 1]} : vector<32x128xbf16> to vector<16x64xbf16>
    %cst_30 = arith.constant dense<0.000000e+00> : vector<16x16xf32>
    %81 = tpu.matmul %78, %79, %cst_30 {dimension_numbers = #tpu.dot_dimension_numbers<[1], [1], [0], [0], [0, 0, 1, 0], [], []>} : vector<16x64xbf16>, vector<16x64xbf16>, vector<16x16xf32> -> vector<16x16xf32>
    %cst_31 = arith.constant dense<0xFF800000> : vector<16xf32>
    %82 = vector.multi_reduction <maximumf>, %81, %cst_31 [1] : vector<16x16xf32> to vector<16xf32>
    %83 = vector.shape_cast %82 : vector<16xf32> to vector<16x1xf32>
    %84 = vector.broadcast %83 : vector<16x1xf32> to vector<16x16xf32>
    %85 = arith.subf %81, %84 : vector<16x16xf32>
    %86 = math.exp %85 : vector<16x16xf32>
    %cst_32 = arith.constant dense<0.000000e+00> : vector<16xf32>
    %87 = vector.multi_reduction <add>, %86, %cst_32 [1] : vector<16x16xf32> to vector<16xf32>
    %88 = vector.shape_cast %87 : vector<16xf32> to vector<16x1xf32>
    %89 = tpu.reciprocal %88 {approx = true} : vector<16x1xf32> -> vector<16x1xf32>
    %90 = vector.broadcast %89 : vector<16x1xf32> to vector<16x16xf32>
    %91 = arith.mulf %86, %90 : vector<16x16xf32>
    %92 = arith.truncf %91 : vector<16x16xf32> to vector<16x16xbf16>
    %cst_33 = arith.constant dense<0.000000e+00> : vector<16x64xf32>
    %93 = tpu.matmul %92, %80, %cst_33 {dimension_numbers = #tpu.dot_dimension_numbers<[1], [0], [0], [1], [0, 0, 1, 1], [], []>} : vector<16x16xbf16>, vector<16x64xbf16>, vector<16x64xf32> -> vector<16x64xf32>
    %c16 = arith.constant 16 : index
    %c0_34 = arith.constant 0 : index
    %94 = vector.load %arg17[%c16, %c0_34] : memref<32x128xf32, #tpu.memory_space<vmem>>, vector<16x64xf32>
    tpu.vector_store %arg17[%c16, %c0_34], %93 {strides = array<i32>} : memref<32x128xf32, #tpu.memory_space<vmem>>, vector<16x64xf32>,
    %95 = vector.extract_strided_slice %39 {offsets = [16, 64], sizes = [16, 64], strides = [1, 1]} : vector<32x128xbf16> to vector<16x64xbf16>
    %96 = vector.extract_strided_slice %41 {offsets = [16, 64], sizes = [16, 64], strides = [1, 1]} : vector<32x128xbf16> to vector<16x64xbf16>
    %97 = vector.extract_strided_slice %43 {offsets = [16, 64], sizes = [16, 64], strides = [1, 1]} : vector<32x128xbf16> to vector<16x64xbf16>
    %cst_35 = arith.constant dense<0.000000e+00> : vector<16x16xf32>
    %98 = tpu.matmul %95, %96, %cst_35 {dimension_numbers = #tpu.dot_dimension_numbers<[1], [1], [0], [0], [0, 0, 1, 0], [], []>} : vector<16x64xbf16>, vector<16x64xbf16>, vector<16x16xf32> -> vector<16x16xf32>
    %cst_36 = arith.constant dense<0xFF800000> : vector<16xf32>
    %99 = vector.multi_reduction <maximumf>, %98, %cst_36 [1] : vector<16x16xf32> to vector<16xf32>
    %100 = vector.shape_cast %99 : vector<16xf32> to vector<16x1xf32>
    %101 = vector.broadcast %100 : vector<16x1xf32> to vector<16x16xf32>
    %102 = arith.subf %98, %101 : vector<16x16xf32>
    %103 = math.exp %102 : vector<16x16xf32>
    %cst_37 = arith.constant dense<0.000000e+00> : vector<16xf32>
    %104 = vector.multi_reduction <add>, %103, %cst_37 [1] : vector<16x16xf32> to vector<16xf32>
    %105 = vector.shape_cast %104 : vector<16xf32> to vector<16x1xf32>
    %106 = tpu.reciprocal %105 {approx = true} : vector<16x1xf32> -> vector<16x1xf32>
    %107 = vector.broadcast %106 : vector<16x1xf32> to vector<16x16xf32>
    %108 = arith.mulf %103, %107 : vector<16x16xf32>
    %109 = arith.truncf %108 : vector<16x16xf32> to vector<16x16xbf16>
    %cst_38 = arith.constant dense<0.000000e+00> : vector<16x64xf32>
    %110 = tpu.matmul %109, %97, %cst_38 {dimension_numbers = #tpu.dot_dimension_numbers<[1], [0], [0], [1], [0, 0, 1, 1], [], []>} : vector<16x16xbf16>, vector<16x64xbf16>, vector<16x64xf32> -> vector<16x64xf32>
    %c16_39 = arith.constant 16 : index
    %c64_40 = arith.constant 64 : index
    %111 = vector.load %arg17[%c16_39, %c64_40] : memref<32x128xf32, #tpu.memory_space<vmem>>, vector<16x64xf32>
    tpu.vector_store %arg17[%c16_39, %c64_40], %110 {strides = array<i32>} : memref<32x128xf32, #tpu.memory_space<vmem>>, vector<16x64xf32>,
    %c0_41 = arith.constant 0 : index
    %c0_42 = arith.constant 0 : index
    %112 = vector.load %arg17[%c0_41, %c0_42] : memref<32x128xf32, #tpu.memory_space<vmem>>, vector<32x128xf32>
    %113 = arith.truncf %112 : vector<32x128xf32> to vector<32x128xbf16>
    %c0_43 = arith.constant 0 : index
    %c0_44 = arith.constant 0 : index
    %c0_45 = arith.constant 0 : index
    %114 = vector.load %arg7[%c0_43, %c0_44, %c0_45] : memref<1x128x128xbf16, #tpu.memory_space<vmem>>, vector<1x128x128xbf16>
    %115 = vector.shape_cast %114 : vector<1x128x128xbf16> to vector<128x128xbf16>
    %cst_46 = arith.constant dense<0.000000e+00> : vector<32x128xf32>
    %116 = tpu.matmul %113, %115, %cst_46 {dimension_numbers = #tpu.dot_dimension_numbers<[1], [0], [0], [1], [0, 0, 1, 1], [], []>} : vector<32x128xbf16>, vector<128x128xbf16>, vector<32x128xf32> -> vector<32x128xf32>
    %c0_47 = arith.constant 0 : index
    %c0_48 = arith.constant 0 : index
    %c0_49 = arith.constant 0 : index
    %117 = vector.load %arg8[%c0_47, %c0_48, %c0_49] : memref<1x1x128xf32, #tpu.memory_space<vmem>>, vector<1x1x128xf32>
    %118 = vector.shape_cast %117 : vector<1x1x128xf32> to vector<1x128xf32>
    %119 = vector.broadcast %118 : vector<1x128xf32> to vector<32x128xf32>
    %120 = arith.addf %116, %119 : vector<32x128xf32>
    %121 = arith.addf %3, %120 : vector<32x128xf32>
    %c0_50 = arith.constant 0 : index
    %c0_51 = arith.constant 0 : index
    %c0_52 = arith.constant 0 : index
    %122 = vector.load %arg9[%c0_50, %c0_51, %c0_52] : memref<1x1x128xf32, #tpu.memory_space<vmem>>, vector<1x1x128xf32>
    %123 = vector.shape_cast %122 : vector<1x1x128xf32> to vector<1x128xf32>
    %c0_53 = arith.constant 0 : index
    %c0_54 = arith.constant 0 : index
    %c0_55 = arith.constant 0 : index
    %124 = vector.load %arg10[%c0_53, %c0_54, %c0_55] : memref<1x1x128xf32, #tpu.memory_space<vmem>>, vector<1x1x128xf32>
    %125 = vector.shape_cast %124 : vector<1x1x128xf32> to vector<1x128xf32>
    %cst_56 = arith.constant dense<0.000000e+00> : vector<32xf32>
    %126 = vector.multi_reduction <add>, %121, %cst_56 [1] : vector<32x128xf32> to vector<32xf32>
    %127 = vector.shape_cast %126 : vector<32xf32> to vector<32x1xf32>
    %cst_57 = arith.constant 1.280000e+02 : f32
    %128 = vector.broadcast %cst_57 : f32 to vector<32x1xf32>
    %129 = arith.divf %127, %128 : vector<32x1xf32>
    %130 = vector.broadcast %129 : vector<32x1xf32> to vector<32x128xf32>
    %131 = arith.subf %121, %130 : vector<32x128xf32>
    %132 = arith.mulf %131, %131 : vector<32x128xf32>
    %cst_58 = arith.constant dense<0.000000e+00> : vector<32xf32>
    %133 = vector.multi_reduction <add>, %132, %cst_58 [1] : vector<32x128xf32> to vector<32xf32>
    %134 = vector.shape_cast %133 : vector<32xf32> to vector<32x1xf32>
    %cst_59 = arith.constant 1.280000e+02 : f32
    %135 = vector.broadcast %cst_59 : f32 to vector<32x1xf32>
    %136 = arith.divf %134, %135 : vector<32x1xf32>
    %137 = vector.broadcast %129 : vector<32x1xf32> to vector<32x128xf32>
    %138 = arith.subf %121, %137 : vector<32x128xf32>
    %cst_60 = arith.constant 9.99999974E-6 : f32
    %139 = vector.broadcast %cst_60 : f32 to vector<32x1xf32>
    %140 = arith.addf %136, %139 : vector<32x1xf32>
    %141 = math.rsqrt %140 : vector<32x1xf32>
    %142 = vector.broadcast %141 : vector<32x1xf32> to vector<32x128xf32>
    %143 = arith.mulf %138, %142 : vector<32x128xf32>
    %144 = vector.broadcast %123 : vector<1x128xf32> to vector<32x128xf32>
    %145 = arith.mulf %143, %144 : vector<32x128xf32>
    %146 = vector.broadcast %125 : vector<1x128xf32> to vector<32x128xf32>
    %147 = arith.addf %145, %146 : vector<32x128xf32>
    %148 = arith.truncf %147 : vector<32x128xf32> to vector<32x128xbf16>
    %c0_61 = arith.constant 0 : index
    %c0_62 = arith.constant 0 : index
    %c0_63 = arith.constant 0 : index
    %149 = vector.load %arg11[%c0_61, %c0_62, %c0_63] : memref<1x128x512xbf16, #tpu.memory_space<vmem>>, vector<1x128x512xbf16>
    %150 = vector.shape_cast %149 : vector<1x128x512xbf16> to vector<128x512xbf16>
    %cst_64 = arith.constant dense<0.000000e+00> : vector<32x512xf32>
    %151 = tpu.matmul %148, %150, %cst_64 {dimension_numbers = #tpu.dot_dimension_numbers<[1], [0], [0], [1], [0, 0, 1, 1], [], []>} : vector<32x128xbf16>, vector<128x512xbf16>, vector<32x512xf32> -> vector<32x512xf32>
    %c0_65 = arith.constant 0 : index
    %c0_66 = arith.constant 0 : index
    %c0_67 = arith.constant 0 : index
    %152 = vector.load %arg12[%c0_65, %c0_66, %c0_67] : memref<1x1x512xf32, #tpu.memory_space<vmem>>, vector<1x1x512xf32>
    %153 = vector.shape_cast %152 : vector<1x1x512xf32> to vector<1x512xf32>
    %154 = vector.broadcast %153 : vector<1x512xf32> to vector<32x512xf32>
    %155 = arith.addf %151, %154 : vector<32x512xf32>
    %156 = arith.truncf %155 : vector<32x512xf32> to vector<32x512xbf16>
    %cst_68 = arith.constant 1.703130e+00 : bf16
    %157 = vector.broadcast %cst_68 : bf16 to vector<32x512xbf16>
    %158 = arith.mulf %157, %156 : vector<32x512xbf16>
    %159 = arith.negf %158 : vector<32x512xbf16>
    %160 = math.exp %159 : vector<32x512xbf16>
    %cst_69 = arith.constant 1.000000e+00 : bf16
    %161 = vector.broadcast %cst_69 : bf16 to vector<32x512xbf16>
    %162 = arith.addf %161, %160 : vector<32x512xbf16>
    %163 = arith.divf %161, %162 : vector<32x512xbf16>
    %164 = arith.mulf %156, %163 : vector<32x512xbf16>
    %c0_70 = arith.constant 0 : index
    %c0_71 = arith.constant 0 : index
    %c0_72 = arith.constant 0 : index
    %165 = vector.load %arg13[%c0_70, %c0_71, %c0_72] : memref<1x512x128xbf16, #tpu.memory_space<vmem>>, vector<1x512x128xbf16>
    %166 = vector.shape_cast %165 : vector<1x512x128xbf16> to vector<512x128xbf16>
    %cst_73 = arith.constant dense<0.000000e+00> : vector<32x128xf32>
    %167 = tpu.matmul %164, %166, %cst_73 {dimension_numbers = #tpu.dot_dimension_numbers<[1], [0], [0], [1], [0, 0, 1, 1], [], []>} : vector<32x512xbf16>, vector<512x128xbf16>, vector<32x128xf32> -> vector<32x128xf32>
    %c0_74 = arith.constant 0 : index
    %c0_75 = arith.constant 0 : index
    %c0_76 = arith.constant 0 : index
    %168 = vector.load %arg14[%c0_74, %c0_75, %c0_76] : memref<1x1x128xf32, #tpu.memory_space<vmem>>, vector<1x1x128xf32>
    %169 = vector.shape_cast %168 : vector<1x1x128xf32> to vector<1x128xf32>
    %170 = vector.broadcast %169 : vector<1x128xf32> to vector<32x128xf32>
    %171 = arith.addf %167, %170 : vector<32x128xf32>
    %172 = arith.addf %121, %171 : vector<32x128xf32>
    %c0_77 = arith.constant 0 : index
    %c0_78 = arith.constant 0 : index
    %173 = vector.load %arg16[%c0_77, %c0_78] : memref<32x128xf32, #tpu.memory_space<vmem>>, vector<32x128xf32>
    tpu.vector_store %arg16[%c0_77, %c0_78], %172 {strides = array<i32>} : memref<32x128xf32, #tpu.memory_space<vmem>>, vector<32x128xf32>,
    %c1_i32 = arith.constant 1 : i32
    %174 = arith.cmpi eq, %arg1, %c1_i32 : i32
    %175 = arith.extui %174 : i1 to i32
    %c0_i32_79 = arith.constant 0 : i32
    %176 = arith.cmpi ne, %175, %c0_i32_79 : i32
    scf.if %176 {
      %c0_80 = arith.constant 0 : index
      %c0_81 = arith.constant 0 : index
      %c0_82 = arith.constant 0 : index
      %177 = vector.load %arg15[%c0_80, %c0_81, %c0_82] : memref<1x32x128xf32, #tpu.memory_space<vmem>>, vector<1x32x128xf32>
      %178 = vector.shape_cast %177 : vector<1x32x128xf32> to vector<32x128xf32>
      %179 = vector.shape_cast %172 : vector<32x128xf32> to vector<1x32x128xf32>
      tpu.vector_store %arg15[%c0_80, %c0_81, %c0_82], %179 {strides = array<i32>} : memref<1x32x128xf32, #tpu.memory_space<vmem>>, vector<1x32x128xf32>,
    } else {
    }
    return
  }
  func.func @transform_0(%arg0: i32, %arg1: i32) -> (i32, i32, i32) {
    %c0_i32 = arith.constant 0 : i32
    %c0_i32_0 = arith.constant 0 : i32
    %c0_i32_1 = arith.constant 0 : i32
    return %arg0, %c0_i32, %c0_i32_0 : i32, i32, i32
  }
  func.func @transform_1(%arg0: i32, %arg1: i32) -> (i32, i32, i32) {
    %c0_i32 = arith.constant 0 : i32
    %c0_i32_0 = arith.constant 0 : i32
    %c0_i32_1 = arith.constant 0 : i32
    return %arg1, %c0_i32, %c0_i32_0 : i32, i32, i32
  }
  func.func @transform_2(%arg0: i32, %arg1: i32) -> (i32, i32, i32) {
    %c0_i32 = arith.constant 0 : i32
    %c0_i32_0 = arith.constant 0 : i32
    %c0_i32_1 = arith.constant 0 : i32
    return %arg1, %c0_i32, %c0_i32_0 : i32, i32, i32
  }
  func.func @transform_3(%arg0: i32, %arg1: i32) -> (i32, i32, i32) {
    %c0_i32 = arith.constant 0 : i32
    %c0_i32_0 = arith.constant 0 : i32
    %c0_i32_1 = arith.constant 0 : i32
    return %arg1, %c0_i32, %c0_i32_0 : i32, i32, i32
  }
  func.func @transform_4(%arg0: i32, %arg1: i32) -> (i32, i32, i32) {
    %c0_i32 = arith.constant 0 : i32
    %c0_i32_0 = arith.constant 0 : i32
    %c0_i32_1 = arith.constant 0 : i32
    return %arg1, %c0_i32, %c0_i32_0 : i32, i32, i32
  }
  func.func @transform_5(%arg0: i32, %arg1: i32) -> (i32, i32, i32) {
    %c0_i32 = arith.constant 0 : i32
    %c0_i32_0 = arith.constant 0 : i32
    %c0_i32_1 = arith.constant 0 : i32
    return %arg1, %c0_i32, %c0_i32_0 : i32, i32, i32
  }
  func.func @transform_6(%arg0: i32, %arg1: i32) -> (i32, i32, i32) {
    %c0_i32 = arith.constant 0 : i32
    %c0_i32_0 = arith.constant 0 : i32
    %c0_i32_1 = arith.constant 0 : i32
    return %arg1, %c0_i32, %c0_i32_0 : i32, i32, i32
  }
  func.func @transform_7(%arg0: i32, %arg1: i32) -> (i32, i32, i32) {
    %c0_i32 = arith.constant 0 : i32
    %c0_i32_0 = arith.constant 0 : i32
    %c0_i32_1 = arith.constant 0 : i32
    return %arg1, %c0_i32, %c0_i32_0 : i32, i32, i32
  }
  func.func @transform_8(%arg0: i32, %arg1: i32) -> (i32, i32, i32) {
    %c0_i32 = arith.constant 0 : i32
    %c0_i32_0 = arith.constant 0 : i32
    %c0_i32_1 = arith.constant 0 : i32
    return %arg1, %c0_i32, %c0_i32_0 : i32, i32, i32
  }
  func.func @transform_9(%arg0: i32, %arg1: i32) -> (i32, i32, i32) {
    %c0_i32 = arith.constant 0 : i32
    %c0_i32_0 = arith.constant 0 : i32
    %c0_i32_1 = arith.constant 0 : i32
    return %arg1, %c0_i32, %c0_i32_0 : i32, i32, i32
  }
  func.func @transform_10(%arg0: i32, %arg1: i32) -> (i32, i32, i32) {
    %c0_i32 = arith.constant 0 : i32
    %c0_i32_0 = arith.constant 0 : i32
    %c0_i32_1 = arith.constant 0 : i32
    return %arg1, %c0_i32, %c0_i32_0 : i32, i32, i32
  }
  func.func @transform_11(%arg0: i32, %arg1: i32) -> (i32, i32, i32) {
    %c0_i32 = arith.constant 0 : i32
    %c0_i32_0 = arith.constant 0 : i32
    %c0_i32_1 = arith.constant 0 : i32
    return %arg1, %c0_i32, %c0_i32_0 : i32, i32, i32
  }
  func.func @transform_12(%arg0: i32, %arg1: i32) -> (i32, i32, i32) {
    %c0_i32 = arith.constant 0 : i32
    %c0_i32_0 = arith.constant 0 : i32
    %c0_i32_1 = arith.constant 0 : i32
    return %arg1, %c0_i32, %c0_i32_0 : i32, i32, i32
  }
  func.func @transform_13(%arg0: i32, %arg1: i32) -> (i32, i32, i32) {
    %c0_i32 = arith.constant 0 : i32
    %c0_i32_0 = arith.constant 0 : i32
    %c0_i32_1 = arith.constant 0 : i32
    return %arg0, %c0_i32, %c0_i32_0 : i32, i32, i32
  }
}

</mosaic_0001>

<bundles_post_ra>
// kernel: transformer_forward.1
= control target key start
LH: loop header
LB: loop body
LE: loop exit
PB: predicated region body
PF: predicated region fallthrough
CT: control target
= control target key end

     0   :  { %s4260_s0 = inlined_call_operand.vmem [shape: f32[2,32,128], index: 0, kind: input, shape index: {}]   ;;  %s4261_s1 = inlined_call_operand.vmem [shape: f32[2,1,128], index: 1, kind: input, shape index: {}]   ;;  %s4262_s2 = inlined_call_operand.vmem [shape: f32[2,1,128], index: 2, kind: input, shape index: {}]   ;;  %s4263_s3 = inlined_call_operand.hbm [shape: bf16[2,128,384], index: 3, kind: input, shape index: {}]   ;;  %s4264_s4 = inlined_call_operand.vmem [shape: f32[2,1,384], index: 4, kind: input, shape index: {}]   ;;  %s4265_s5 = inlined_call_operand.vmem [shape: bf16[2,128,128], index: 5, kind: input, shape index: {}]   ;;  %s4266_s6 = inlined_call_operand.vmem [shape: f32[2,1,128], index: 6, kind: input, shape index: {}]   ;;  %s4267_s7 = inlined_call_operand.vmem [shape: f32[2,1,128], index: 7, kind: input, shape index: {}]   ;;  %s4268_s8 = inlined_call_operand.vmem [shape: f32[2,1,128], index: 8, kind: input, shape index: {}]   ;;  %s4269_s9 = inlined_call_operand.hbm [shape: bf16[2,128,512], index: 9, kind: input, shape index: {}]   ;;  %s4270_s10 = inlined_call_operand.vmem [shape: f32[2,1,512], index: 10, kind: input, shape index: {}]   ;;  %s4271_s11 = inlined_call_operand.hbm [shape: bf16[2,512,128], index: 11, kind: input, shape index: {}]   ;;  %s4272_s12 = inlined_call_operand.vmem [shape: f32[2,1,128], index: 12, kind: input, shape index: {}]   ;;  %s4273_s13 = inlined_call_operand.vmem [shape: f32[2,32,128], index: 13, kind: output, shape index: {}]  }
   0x1   :  { %4285 = sst [smem:[#allocation20_spill]] %s4260_s0 }
   0x2   :  { %4286 = sst [smem:[#allocation21_spill]] %s4263_s3 }
   0x3   :  { %4287 = sst [smem:[#allocation22_spill]] %s4264_s4 }
   0x4   :  { %4288 = sst [smem:[#allocation23_spill]] %s4265_s5 }
   0x5   :  { %4289 = sst [smem:[#allocation24_spill]] %s4266_s6 }
   0x6   :  { %4290 = sst [smem:[#allocation25_spill]] %s4267_s7 }
   0x7   :  { %4291 = sst [smem:[#allocation26_spill]] %s4268_s8 }
   0x8   :  { %4292 = sst [smem:[#allocation27_spill]] %s4269_s9 }
   0x9   :  { %4293 = sst [smem:[#allocation28_spill]] %s4270_s10 }
   0xa   :  { %4294 = sst [smem:[#allocation29_spill]] %s4271_s11 }
   0xb   :  { %4295 = sst [smem:[#allocation30_spill]] %s4272_s12 }
   0xc   :  { %4296 = sst [smem:[#allocation31_spill]] %s4273_s13 }
   0xd   :  { %18 = vsyncpa [#allocation5], 0 }
   0xe   :  { %20 = vsyncpa [#allocation5 + $0x1], 0 }
   0xf   :  { %21 = vsyncpa [#allocation7], 0 }
  0x10   :  { %23 = vsyncpa [#allocation7 + $0x1], 0  ;;  %s3654_s25 = smov 0   ;;  %s3656_s26 = smov 0  }
  0x11   :  { %s3658_s27 = smov 0   ;;  %s3660_s28 = smov 0  }
  0x12   :  { %s3662_s29 = smov 0   ;;  %s3664_s30 = smov 0  }
  0x13   :  { %s3666_s14 = smov 0   ;;  %s3668_s15 = smov 0  }
  0x14 LB: > { %4297 = sst [smem:[#allocation11_spill]] %s3545_s26  ;;  %s4274_s16 = sadd.s32 4294967295, %s3569_s15   ;;  %s3569_s15 = sphi %s3668_s15, %s29_s15   ;;  %s3565_s14 = sphi %s3666_s14, %s4342_s14   ;;  %s3561_s30 = sphi %s3664_s30, %s4341_s30   ;;  %s3557_s29 = sphi %s3662_s29, %s4340_s29   ;;  %s3553_s28 = sphi %s3660_s28, %s4339_s28   ;;  %s3549_s27 = sphi %s3658_s27, %s4338_s27   ;;  %s3545_s26 = sphi %s3656_s26, %s4337_s26   ;;  %s3541_s25 = sphi %s3654_s25, %s4336_s25  }
  0x15   : > { %4298 = sst [smem:[#allocation12_spill]] %s3549_s27  ;;  %s38_s17 = sadd.s32 1, %s3561_s30 }
  0x16   : > { %4299 = sst [smem:[#allocation13_spill]] %s3561_s30  ;;  %p39_p0 = scmp.ge.s32.totalorder %s38_s17, 2 }
  0x17   : > { %4300 = sst [smem:[#allocation14_spill]] %s3565_s14  ;;  %s41_s18 = sadd.s32 1, %s3565_s14 }
  0x18   : > { %4301 = sst [smem:[#allocation15_spill]] %s3569_s15  ;;  %s126_s19 = sadd.s32 1, %s3549_s27 }
  0x19   : > { %p133_p1 = scmp.ne.s32.totalorder %s3549_s27, %s3545_s26  ;;  %s4344_s17 = smov (%p39_p0, %s38_s17), 0 }
  0x1a   : > { %4302 = sst [smem:[#allocation16_spill]] %s4344_s17  ;;  %s4346_s18 = smov (!%p39_p0, %s41_s18), %s3565_s14 }
  0x1b   : > { %s123_s20 = ssub.s32 %s3561_s30, %s4344_s17  ;;  %p134_p2 = scmp.eq.s32.totalorder %s3569_s15, 0 }
  0x1c   : > { %p43_p3 = scmp.ge.s32.totalorder %s4346_s18, 2  ;;  %p124_p4 = scmp.eq.s32.totalorder %s123_s20, 0 }
  0x1d   : > { %p135_p5 = por %p134_p2, %p133_p1  ;;  %p139_p6 = scmp.ne.s32.totalorder %s3545_s26, %s3541_s25 }
  0x1e   : > { %s4348_s18 = smov (%p43_p3, %s4346_s18), 0  ;;  %p140_p7 = scmp.eq.s32.totalorder %s4274_s16, 0 }
  0x1f   : > { %4303 = sst [smem:[#allocation17_spill]] %s4348_s18  ;;  %p3130_p8 = scmp.lt.s32.totalorder %s3569_s15, 4 }
  0x20   : > { %s3708_s21 = scalar_select %p124_p4, %s3549_s27, %s126_s19  }
  0x21   : > { %s3714_s22 = sand.u32 1, %s3549_s27   ;;  %p3716_p9 = por %p140_p7, %p139_p6 }
  0x22   : > { %4304 = sst [smem:[#allocation18_spill]] %s3708_s21  ;;  %s497_s24 = sand.u32 1, %s3569_s15  }
  0x23   : > { %s4305_s23 = scalar_select %p3716_p9, 1, 0 }
  0x24   : > { %p3721_p10 = pnand %p3130_p8, %p135_p5  ;;  %s4278_s25 = sshll.u32 %s3714_s22, 8 }
  0x25   : > { %s4279_s19 = sshll.u32 %s3561_s30, 12  ;;  %s4307_s9 = sld [smem:[#allocation27_spill]] }
  0x26   : > { %s501_s14 = scalar_lea.vmem [#allocation6], %s4278_s25  ;;  %s3738_s27 = scalar_lea.sflag [#allocation7], %s497_s24 }
  0x27   : > { %s508_s21 = sshll.u32 %s501_s14, 4  ;;  %p3744_p12 = pneg %p3721_p10  ;;  %s3736_s21 = int_to_ptr.vmem [resolvable:$true] %s508_s21 }
  0x2b   : > { %s3732_s17 = scalar_lea.hbm %s4307_s9, %s4279_s19  ;;  %s3414_s25 = scalar_lea.hbm %s4307_s9, 8192 }
  0x2c   : > { %s3409_s13 = scalar_lea.hbm %s3732_s17, 4096  ;;  %p3415_p1 = scmp.lt.u32.totalorder %s3732_s17, %s4307_s9 }
  0x2d   : > { %p3410_p11 = scmp.ne.s32.totalorder %s3732_s17, %s3409_s13  ;;  %p3416_p2 = scmp.lt.u32.totalorder %s3414_s25, %s3409_s13 }
  0x2e   : > { %p3418_p4 = scmp.lt.u32.totalorder %s3409_s13, %s3732_s17 }
  0x2f   : > { %p3412_p13 = pnand %p3744_p12, %p3410_p11  ;;  %p3417_p3 = por %p3416_p2, %p3415_p1 }
  0x31   : > { %p3413_p0 = pneg %p3412_p13  ;;  %p3419_p5 = por %p3418_p4, %p3417_p3 }
  0x33   : > { %p3420_p6 = pnand %p3419_p5, %p3413_p0 }
  0x35   : > { %3423 = shalt.err (!%p3420_p6)
}
  0x36   : > { %s3424_s24 = scalar_lea.vmem %s3736_s21, 4096  ;;  %s3571_s16 = smov [#allocation6]  }
  0x37   : > { %p3425_p7 = scmp.ne.s32.totalorder %s3736_s21, %s3424_s24  ;;  %s3429_s18 = sshll.u32 %s3571_s16, 4  ;;  %s3430_s18 = int_to_ptr.vmem [resolvable:$false] %s3429_s18 }
  0x38   : > { %s3431_s19 = scalar_lea.vmem %s3430_s18, 8192  ;;  %p3432_p13 = scmp.lt.s32.totalorder %s3736_s21, %s3430_s18 }
  0x39   : > { %p3427_p8 = pnand %p3425_p7, %p3744_p12  ;;  %p3433_p9 = scmp.lt.s32.totalorder %s3431_s19, %s3424_s24 }
  0x3b   : > { %p3428_p11 = pneg %p3427_p8  ;;  %p3434_p1 = por %p3433_p9, %p3432_p13 }
  0x3d   : > { %p3435_p2 = pnand %p3434_p1, %p3428_p11 }
  0x3f   : > { %3438 = shalt.err (!%p3435_p2)
}
  0x40   : > { %s3572_s13 = smov 256   ;;  %s3573_s25 = smov 16  }
  0x41   : > { %3126 = dma.hbm_to_vmem [thread:$0]  (!%p3721_p10), %s3732_s17, 4096, %s3736_s21, %s3738_s27, %s3572_s13, %s3572_s13, %s3573_s25  }
  0x42   : > { %s4309_s14 = sshll.u32 %s3561_s30, 12  ;;  %s4310_s11 = sld [smem:[#allocation29_spill]] }
  0x43   : > { %s4311_s19 = sshll.u32 %s3714_s22, 8  ;;  %p2793_p9 = scmp.ge.s32.totalorder %s3569_s15, 1 }
  0x44   : > { %s529_s9 = scalar_lea.vmem [#allocation8], %s4311_s19  ;;  %p550_p0 = scmp.lt.s32.totalorder %s3569_s15, 5 }
  0x45   : > { %s536_s12 = sshll.u32 %s529_s9, 4  ;;  %s3110_s7 = smul.u32 192, %s3714_s22  ;;  %s3777_s12 = int_to_ptr.vmem [resolvable:$true] %s536_s12 }
  0x46   : > { %p3781_p3 = pnand %p2793_p9, %p550_p0  ;;  %s3111_s17 = smul.u32 3072, %s3561_s30 }
  0x47   : > { %s4313_s3 = sld [smem:[#allocation21_spill]]  ;;  %s447_s9 = scalar_lea.vmem [#allocation4], %s3110_s7 }
  0x48   : > { %s3773_s18 = scalar_lea.hbm %s4310_s11, %s4309_s14  ;;  %s454_s14 = sshll.u32 %s447_s9, 4  ;;  %s3792_s14 = int_to_ptr.vmem [resolvable:$true] %s454_s14 }
  0x49   : > { %s4312_s8 = scalar_select %p3781_p3, 1, 0 }
  0x4a   : > { %s444_s24 = scalar_lea.sflag [#allocation5], %s3714_s22 }
  0x4d   : > { %s3790_s25 = scalar_lea.hbm %s4313_s3, %s3111_s17  ;;  %s3444_s21 = scalar_lea.hbm %s4313_s3, 6144 }
  0x4e   : > { %s3439_s16 = scalar_lea.hbm %s3790_s25, 3072  ;;  %p3445_p7 = scmp.lt.u32.totalorder %s3790_s25, %s4313_s3 }
  0x4f   : > { %p3440_p4 = scmp.ne.s32.totalorder %s3790_s25, %s3439_s16  ;;  %p3446_p8 = scmp.lt.u32.totalorder %s3444_s21, %s3439_s16 }
  0x50   : > { %p3448_p13 = scmp.lt.u32.totalorder %s3439_s16, %s3790_s25 }
  0x51   : > { %p3442_p5 = pnand %p3440_p4, %p3744_p12  ;;  %p3447_p11 = por %p3446_p8, %p3445_p7 }
  0x53   : > { %p3443_p6 = pneg %p3442_p5  ;;  %p3449_p1 = por %p3448_p13, %p3447_p11 }
  0x55   : > { %p3450_p2 = pnand %p3449_p1, %p3443_p6 }
  0x57   : > { %3453 = shalt.err (!%p3450_p2)
}
  0x58   : > { %s3454_s7 = scalar_lea.vmem %s3792_s14, 3072  ;;  %s3574_s30 = smov [#allocation4]  }
  0x59   : > { %p3455_p9 = scmp.ne.s32.totalorder %s3792_s14, %s3454_s7  ;;  %s3459_s9 = sshll.u32 %s3574_s30, 4  ;;  %s3460_s9 = int_to_ptr.vmem [resolvable:$false] %s3459_s9 }
  0x5a   : > { %s3461_s19 = scalar_lea.vmem %s3460_s9, 6144  ;;  %p3462_p5 = scmp.lt.s32.totalorder %s3792_s14, %s3460_s9 }
  0x5b   : > { %p3457_p0 = pnand %p3455_p9, %p3744_p12  ;;  %p3463_p3 = scmp.lt.s32.totalorder %s3461_s19, %s3454_s7 }
  0x5d   : > { %p3458_p4 = pneg %p3457_p0  ;;  %p3464_p7 = por %p3463_p3, %p3462_p5 }
  0x5f   : > { %p3465_p8 = pnand %p3464_p7, %p3458_p4 }
  0x61   : > { %3468 = shalt.err (!%p3465_p8)
}
  0x62   : > { %s3575_s16 = smov 192   ;;  %s3576_s21 = smov 12  }
  0x63   : > { %3123 = dma.hbm_to_vmem [thread:$0]  (!%p3721_p10), %s3790_s25, 3072, %s3792_s14, %s444_s24, %s3575_s16, %s3575_s16, %s3576_s21  }
  0x64   : > { %s3469_s17 = scalar_lea.hbm %s3773_s18, 4096  ;;  %s3474_s30 = scalar_lea.hbm %s4310_s11, 8192 }
  0x65   : > { %p3470_p6 = scmp.ne.s32.totalorder %s3773_s18, %s3469_s17  ;;  %p3475_p13 = scmp.lt.u32.totalorder %s3773_s18, %s4310_s11 }
  0x66   : > { %p3476_p1 = scmp.lt.u32.totalorder %s3474_s30, %s3469_s17  ;;  %p3478_p9 = scmp.lt.u32.totalorder %s3469_s17, %s3773_s18 }
  0x67   : > { %p3472_p3 = pnand %p3470_p6, %p3744_p12 }
  0x68   : > { %p3477_p2 = por %p3476_p1, %p3475_p13 }
  0x69   : > { %p3473_p11 = pneg %p3472_p3 }
  0x6a   : > { %p3479_p0 = por %p3478_p9, %p3477_p2 }
  0x6c   : > { %p3480_p4 = pnand %p3479_p0, %p3473_p11 }
  0x6e   : > { %3483 = shalt.err (!%p3480_p4)
}
  0x6f   : > { %s3484_s22 = scalar_lea.vmem %s3777_s12, 4096  ;;  %s3577_s25 = smov [#allocation8]  }
  0x70   : > { %p3485_p5 = scmp.ne.s32.totalorder %s3777_s12, %s3484_s22  ;;  %s3489_s14 = sshll.u32 %s3577_s25, 4  ;;  %s3490_s14 = int_to_ptr.vmem [resolvable:$false] %s3489_s14 }
  0x71   : > { %s3491_s24 = scalar_lea.vmem %s3490_s14, 8192  ;;  %p3492_p6 = scmp.lt.s32.totalorder %s3777_s12, %s3490_s14 }
  0x72   : > { %p3487_p7 = pnand %p3485_p5, %p3744_p12  ;;  %p3493_p3 = scmp.lt.s32.totalorder %s3491_s24, %s3484_s22 }
  0x74   : > { %p3488_p8 = pneg %p3487_p7  ;;  %p3494_p13 = por %p3493_p3, %p3492_p6 }
  0x76   : > { %p3495_p1 = pnand %p3494_p13, %p3488_p8 }
  0x78   : > { %3498 = shalt.err (!%p3495_p1)
}
  0x79   : > { %s3578_s16 = smov 64   ;;  %s3579_s21 = smov 4  }
  0x7a   : > { %3129 = dma.hbm_to_vmem [thread:$0]  (!%p3721_p10), %s3773_s18, 4096, %s3777_s12, %s3738_s27, %s3578_s16, %s3578_s16, %s3579_s21  }
  0x7b   : > { %p4314_p12 = scmp.ne.s32.totalorder %s4312_s8, 0 }
  0x7d   : > { %554 = sbr.rel (%p4314_p12) target bundleno = 2731 (0xaab), region = 72 }
  0x84   : > { %s3843_s10 = sand.u32 1, %s3545_s26   ;;  %p4315_p11 = scmp.ne.s32.totalorder %s4305_s23, 0 }
  0x85   : > { %s3112_s17 = smul.u32 192, %s3843_s10  ;;  %s557_s13 = scalar_lea.sflag [#allocation5], %s3843_s10 }
  0x87   : > { %s3847_s7 = scalar_lea.vmem [#allocation4], %s3112_s17 }
  0x88   : > { %3532 = dma.done.wait (%p4315_p11), %s557_s13, 3072  }
  0x89   : > { %3534 = vsyncadd (%p4315_p11), %s557_s13, 4294964224  ;;  %s4316_s12 = sadd.s32 4294967295, %s3569_s15   ;;  %s2794_s27 = sshll.u32 %s3843_s10, 8 }
  0x8a   : > { %s565_s8 = sand.u32 1, %s4316_s12   ;;  %s3856_s18 = scalar_lea.vmem [#allocation6], %s2794_s27 }
  0x8b   : > { %s566_s20 = scalar_lea.sflag [#allocation7], %s565_s8  ;;  %4317 = sst [smem:[#allocation19_spill]] %s3856_s18 }
  0x8c   : > { %3536 = dma.done.wait (%p4315_p11), %s566_s20, 8192  }
  0x8d   : > { %3538 = vsyncadd (%p4315_p11), %s566_s20, 4294959104  ;;  %p667_p10 = scmp.lt.s32.totalorder %s3557_s29, 1  ;;  %p672_p2 = scmp.lt.s32.totalorder %s3553_s28, 1 }
  0x8e   : > { %s4318_s0 = sld [smem:[#allocation20_spill]]  ;;  %s4320_s4 = sld [smem:[#allocation22_spill]] }
  0x8f   : > { %s4350_s29 = smov (!%p667_p10, %s3557_s29), 1  ;;  %s4321_s5 = sld [smem:[#allocation23_spill]] }
  0x90   : > { %s3866_s30 = scalar_select %p672_p2, %s3553_s28, 1 }
  0x91   : > { %s2927_s23 = sshll.u32 %s4350_s29, 5  ;;  %s4322_s16 = sld [smem:[#allocation25_spill]] }
  0x92   : > { %s3113_s17 = smul.u32 3, %s3866_s30  ;;  %s2928_s13 = sshll.u32 %s3866_s30, 6 }
  0x93   : > { %s4323_s26 = sld [smem:[#allocation26_spill]]  ;;  %s2800_s12 = sshll.u32 %s3866_s30, 2 }
  0x94   : > { %s671_s22 = scalar_lea.vmem %s4318_s0, %s2927_s23  ;;  %s3888_s11 = scalar_lea.vmem %s4320_s4, %s3113_s17 }
  0x95   : > { %s3893_s25 = scalar_lea.vmem %s4321_s5, %s2928_s13  ;;  %s4324_s18 = sld [smem:[#allocation30_spill]] }
  0x96   : > { %s4325_s4 = sld [smem:[#allocation28_spill]]  ;;  %s4326_s19 = sld [smem:[#allocation31_spill]] }
  0x97   : > { %s692_s21 = scalar_lea.vmem %s4322_s16, %s3866_s30  ;;  %s3918_s24 = scalar_lea.vmem [#allocation8], %s2794_s27 }
  0x98   : > { %p2803_p9 = scmp.ne.s32.totalorder %s3553_s28, 0 }
  0x99   : > { %s695_s15 = scalar_lea.vmem %s4323_s26, %s3866_s30  ;;  %v715_v0 = vld [vmem:[%s671_s22] sm:$0xff] (!%p2803_p9)  ;;  %v716_v1 = vld [vmem:[%s671_s22 + $0x8] sm:$0xff] (!%p2803_p9)  ;;  %v717_v2 = vld [vmem:[%s671_s22 + $0x10] sm:$0xff] (!%p2803_p9) }
  0x9a   : > { %714 = sbr.rel (%p2803_p9) target bundleno = 161 (0xa1), region = 88  ;;  %719 = vst [vmem:[#allocation2] sm:$0xff] (!%p2803_p9), %v715_v0  ;;  %720 = vst [vmem:[#allocation2 + $0x8] sm:$0xff] (!%p2803_p9), %v716_v1  ;;  %v718_v3 = vld [vmem:[%s671_s22 + $0x18] sm:$0xff] (!%p2803_p9) }
  0x9b   : > { %s702_s3 = scalar_lea.vmem %s4324_s18, %s3866_s30  ;;  %721 = vst [vmem:[#allocation2 + $0x10] sm:$0xff] (!%p2803_p9), %v717_v2  ;;  %722 = vst [vmem:[#allocation2 + $0x18] sm:$0xff] (!%p2803_p9), %v718_v3 }
  0x9c   : > { %s3911_s6 = scalar_lea.vmem %s4325_s4, %s2800_s12  ;;  %s3916_s5 = scalar_lea.vmem %s4326_s19, %s2927_s23 }
  0xa1 PF: > { %v723_v4 = vld [vmem:[#allocation2] sm:$0xff]  ;;  %v724_v6 = vld [vmem:[#allocation2 + $0x8] sm:$0xff]  ;;  %v3215_v31 = vld [vmem:[%s3847_s7 + $0x30] ss:$12 sps:$4 sm:$0xff]   ;;  %v3580_v43 = vmov 0   ;;  %s4327_s26 = scalar_lea.vmem %s4261_s1, %s3866_s30  ;;  %s4328_s18 = scalar_lea.vmem %s4262_s2, %s3866_s30  ;;  %vm3582_vm0 = vmmov 0  }
  0xa2   : > { %v725_v5 = vld [vmem:[#allocation2 + $0x10] sm:$0xff]  ;;  %729 = vadd.xlane.f32.xlu0 %v723_v4  ;;  %v726_v7 = vld [vmem:[#allocation2 + $0x18] sm:$0xff]  ;;  %v3207_v9 = vld [vmem:[%s3847_s7] ss:$12 sps:$4 sm:$0xff]   ;;  %1005 = vmatprep.mubr.bf16.mxu0 %v3580_v43  ;;  %vm1081_vm1 = vcmask 523264   ;;  %vm1129_vm2 = vcmask 130048  }
  0xa3   : > { %733 = vadd.xlane.f32.xlu1 %v725_v5  ;;  %v3205_v8 = vld [vmem:[%s3847_s7 + $0x4] ss:$12 sps:$4 sm:$0xff]   ;;  %v3208_v10 = vld [vmem:[%s3847_s7 + $0x1c] ss:$12 sps:$4 sm:$0xff]   ;;  %v3212_v29 = vld [vmem:[%s3847_s7 + $0x34] ss:$12 sps:$4 sm:$0xff]  }
  0xa4   : > { %v3210_v11 = vld [vmem:[%s3847_s7 + $0x8] ss:$12 sps:$4 sm:$0xff]   ;;  %973 = vmatprep.subr.bf16.mxu0 %v3205_v8  ;;  %v3211_v28 = vld [vmem:[%s3847_s7 + $0x18] ss:$12 sps:$4 sm:$0xff]   ;;  %v3214_v30 = vld [vmem:[%s3847_s7 + $0x20] ss:$12 sps:$4 sm:$0xff]  }
  0xa5   : > { %974 = vmatpush1.bf16.msra.mxu0 %v3207_v9  ;;  %3022 = vmatprep.subr.bf16.mxu1 %v3210_v11  ;;  %v3216_v32 = vld [vmem:[%s3847_s7 + $0x4c] ss:$12 sps:$4 sm:$0xff]   ;;  %v3219_v34 = vld [vmem:[%s3847_s7 + $0x48] ss:$12 sps:$4 sm:$0xff]   ;;  %v3220_v35 = vld [vmem:[%s3847_s7 + $0x64] ss:$12 sps:$4 sm:$0xff]  }
  0xa6   : > { %731 = vadd.xlane.f32.xlu0 %v724_v6  ;;  %975 = vmatprep.subr.bf16.mxu0 %v3208_v10  ;;  %v3218_v33 = vld [vmem:[%s3847_s7 + $0x38] ss:$12 sps:$4 sm:$0xff]   ;;  %v3222_v36 = vld [vmem:[%s3847_s7 + $0x50] ss:$12 sps:$4 sm:$0xff]   ;;  %v3223_v37 = vld [vmem:[%s3847_s7 + $0x60] ss:$12 sps:$4 sm:$0xff]  }
  0xa7   : > { %735 = vadd.xlane.f32.xlu1 %v726_v7  ;;  %3023 = vmatpush3.bf16.msra.mxu1 %v3210_v11  ;;  %v3224_v38 = vld [vmem:[%s3847_s7 + $0x7c] ss:$12 sps:$4 sm:$0xff]   ;;  %v3227_v40 = vld [vmem:[%s3847_s7 + $0x78] ss:$12 sps:$4 sm:$0xff]   ;;  %v3228_v41 = vld [vmem:[%s3847_s7 + $0x94] ss:$12 sps:$4 sm:$0xff]  }
  0xa8   : > { %3024 = vmatprep.subr.bf16.mxu1 %v3214_v30  ;;  %v3226_v39 = vld [vmem:[%s3847_s7 + $0x68] ss:$12 sps:$4 sm:$0xff]   ;;  %v3230_v42 = vld [vmem:[%s3847_s7 + $0x80] ss:$12 sps:$4 sm:$0xff]   ;;  %v3231_v44 = vld [vmem:[%s3847_s7 + $0x90] ss:$12 sps:$4 sm:$0xff]  }
  0xa9   : > { %976 = vmatpush1.bf16.msra.mxu0 %v3211_v28  ;;  %v3232_v45 = vld [vmem:[%s3847_s7 + $0xac] ss:$12 sps:$4 sm:$0xff]   ;;  %v3235_v47 = vld [vmem:[%s3847_s7 + $0xa8] ss:$12 sps:$4 sm:$0xff]   ;;  %v3236_v48 = vld [vmem:[%s3847_s7 + $0xb0] ss:$12 sps:$4 sm:$0xff]  }
  0xaa   : > { %977 = vmatprep.subr.bf16.mxu0 %v3212_v29  ;;  %v3234_v46 = vld [vmem:[%s3847_s7 + $0x98] ss:$12 sps:$4 sm:$0xff]   ;;  %v2804_v63 = vld [vmem:[%s4327_s26] ss:$0 sm:$0xff]  ;;  %vm1331_vm3 = vcmask 1048064   ;;  %s4329_s10 = sld [smem:[#allocation24_spill]] }
  0xab   : > { %3025 = vmatpush3.bf16.msra.mxu1 %v3214_v30  ;;  %p2922_p0 = scmp.ne.s32.totalorder %s3553_s28, 1 }
  0xac   : > { %3026 = vmatprep.subr.bf16.mxu1 %v3218_v33 }
  0xad   : > { %978 = vmatpush1.bf16.msra.mxu0 %v3215_v31 }
  0xae   : > { %979 = vmatprep.subr.bf16.mxu0 %v3216_v32 }
  0xaf   : > { %3027 = vmatpush3.bf16.msra.mxu1 %v3218_v33 }
  0xb0   : > { %3028 = vmatprep.subr.bf16.mxu1 %v3222_v36  ;;  %s4330_s20 = scalar_lea.vmem %s4329_s10, %s3866_s30 }
  0xb1   : > { %980 = vmatpush1.bf16.msra.mxu0 %v3219_v34 }
  0xb2   : > { %981 = vmatprep.subr.bf16.mxu0 %v3220_v35 }
  0xb3   : > { %3029 = vmatpush3.bf16.msra.mxu1 %v3222_v36 }
  0xb4   : > { %3030 = vmatprep.subr.bf16.mxu1 %v3226_v39 }
  0xb5   : > { %982 = vmatpush1.bf16.msra.mxu0 %v3223_v37 }
  0xb6   : > { %983 = vmatprep.subr.bf16.mxu0 %v3224_v38 }
  0xb7   : > { %3031 = vmatpush3.bf16.msra.mxu1 %v3226_v39 }
  0xb8   : > { %3032 = vmatprep.subr.bf16.mxu1 %v3230_v42 }
  0xb9   : > { %984 = vmatpush1.bf16.msra.mxu0 %v3227_v40 }
  0xba   : > { %985 = vmatprep.subr.bf16.mxu0 %v3228_v41 }
  0xbb   : > { %3033 = vmatpush3.bf16.msra.mxu1 %v3230_v42 }
  0xbc   : > { %3034 = vmatprep.subr.bf16.mxu1 %v3234_v46 }
  0xbd   : > { %986 = vmatpush1.bf16.msra.mxu0 %v3231_v44 }
  0xbe   : > { %987 = vmatprep.subr.bf16.mxu0 %v3232_v45 }
  0xbf   : > { %3035 = vmatpush3.bf16.msra.mxu1 %v3234_v46 }
  0xc0   : > { %3036 = vmatprep.subr.bf16.mxu1 %v3236_v48 }
  0xc1   : > { %988 = vmatpush1.bf16.msra.mxu0 %v3235_v47 }
  0xc3   : > { %3037 = vmatpush3.bf16.msra.mxu1 %v3236_v48 }
 0x12f   : > { %v730_v12 = vpop.xlane.xlu0 %729 }
 0x130   : > { %v734_v13 = vpop.xlane.xlu1 %733  ;;  %v738_v14 = vmul.f32 0.0078125, %v730_v12 }
 0x131   : > { %v740_v15 = vmul.f32 0.0078125, %v734_v13 }
 0x132   : > { %v3925_v16 = vsub.f32 %v723_v4, %v738_v14  ;;  %v2805_v4 = vld [vmem:[%s4328_s18] ss:$0 sm:$0xff] }
 0x133   : > { %v3927_v17 = vsub.f32 %v725_v5, %v740_v15  ;;  %v732_v18 = vpop.xlane.xlu0 %731 }
 0x134   : > { %v736_v19 = vpop.xlane.xlu1 %735  ;;  %v739_v20 = vmul.f32 0.0078125, %v732_v18  ;;  %v746_v21 = vmul.f32 %v3925_v16, %v3925_v16  ;;  %v830_v18 = vlaneseq }
 0x135   : > { %v741_v22 = vmul.f32 0.0078125, %v736_v19  ;;  %v748_v25 = vmul.f32 %v3927_v17, %v3927_v17 }
 0x136   : > { %v3931_v23 = vsub.f32 %v724_v6, %v739_v20  ;;  %750 = vadd.xlane.f32.xlu0 %v746_v21  ;;  %v3983_v19 = vshrl.u32 %v830_v18, 7  ;;  %v828_v21 = vld [vmem:[%s3888_s11] sm:$0x7]  ;;  %s3583_s11 = smov 64  }
 0x137   : > { %v3933_v24 = vsub.f32 %v726_v7, %v741_v22 }
 0x138   : > { %v747_v26 = vmul.f32 %v3931_v23, %v3931_v23  ;;  %v832_v20 = vsub.s32 0, %v3983_v19  ;;  %v836_v22 = vsub.s32 1, %v3983_v19 }
 0x139   : > { %v749_v27 = vmul.f32 %v3933_v24, %v3933_v24 }
 0x13a   : > { %754 = vadd.xlane.f32.xlu0 %v748_v25  ;;  %752 = vadd.xlane.f32.xlu1 %v747_v26  ;;  %v837_v26 = vrot.slane %v828_v21, %v836_v22 }
 0x13e   : > { %756 = vadd.xlane.f32.xlu1 %v749_v27 }
 0x1c3   : > { %v751_v49 = vpop.xlane.xlu0 %750 }
 0x1c4   : > { %v758_v50 = vmul.f32 0.0078125, %v751_v49 }
 0x1c6   : > { %v762_v51 = vadd.f32 1e-05, %v758_v50 }
 0x1c7   : > { %v753_v52 = vpop.xlane.xlu1 %752  ;;  %v755_v53 = vpop.xlane.xlu0 %754 }
 0x1c8   : > { %3325 = vrsqrt.f32 %v762_v51  ;;  %v759_v54 = vmul.f32 0.0078125, %v753_v52  ;;  %v760_v55 = vmul.f32 0.0078125, %v755_v53 }
 0x1ca   : > { %v763_v56 = vadd.f32 1e-05, %v759_v54  ;;  %v764_v57 = vadd.f32 1e-05, %v760_v55 }
 0x1cb   : > { %v757_v58 = vpop.xlane.xlu1 %756 }
 0x1cc   : > { %3327 = vrsqrt.f32 %v763_v56  ;;  %v761_v59 = vmul.f32 0.0078125, %v757_v58 }
 0x1cd   : > { %3329 = vrsqrt.f32 %v764_v57 }
 0x1ce   : > { %v765_v60 = vadd.f32 1e-05, %v761_v59 }
 0x1d0   : > { %3331 = vrsqrt.f32 %v765_v60 }
 0x1d2   : > { %v3326_v61 = vpop.eup %3325 }
 0x1d3   : > { %v770_v62 = vmul.f32 %v3326_v61, %v3925_v16 }
 0x1d5   : > { %v780_v3 = vmul.f32 %v2804_v63, %v770_v62 }
 0x1d6   : > { %v3328_v0 = vpop.eup %3327 }
 0x1d7   : > { %v3330_v1 = vpop.eup %3329  ;;  %v771_v2 = vmul.f32 %v3328_v0, %v3931_v23  ;;  %v790_v8 = vadd.f32 %v2805_v4, %v780_v3  ;;  %v840_v23 = vsub.s32 2, %v3983_v19 }
 0x1d8   : > { %v772_v5 = vmul.f32 %v3330_v1, %v3927_v17  ;;  %v3581_v17 = vmov 0.0  }
 0x1d9   : > { %v781_v6 = vmul.f32 %v2804_v63, %v771_v2  ;;  %3042 = vmatprep.subr.bf16.mxu0 %v3581_v17  ;;  %3054 = vmatprep.subr.bf16.mxu1 %v3581_v17  ;;  %v841_v28 = vrot.slane %v828_v21, %v840_v23 }
 0x1da   : > { %v3332_v7 = vpop.eup %3331  ;;  %v782_v11 = vmul.f32 %v2804_v63, %v772_v5 }
 0x1db   : > { %v791_v9 = vadd.f32 %v2805_v4, %v781_v6  ;;  %v773_v10 = vmul.f32 %v3332_v7, %v3933_v24  ;;  %v833_v24 = vrot.slane %v828_v21, %v832_v20 }
 0x1dc   : > { %v792_v14 = vadd.f32 %v2805_v4, %v782_v11 }
 0x1dd   : > { %v794_v12 = vpack.c.bf16 %v791_v9, %v790_v8  ;;  %v783_v13 = vmul.f32 %v2804_v63, %v773_v10 }
 0x1df   : > { %1006 = vmatmul.mubr.bf16.vlgmr.msra.gmra.mrb[0].mxu0 %v794_v12  ;;  %3038 = vmatprep.mubr.bf16.mxu1 %v794_v12  ;;  %v793_v15 = vadd.f32 %v2805_v4, %v783_v13 }
 0x1e0   : > { %1015 = vmatprep.mubr.bf16.mxu0 %v3580_v43 }
 0x1e1   : > { %v795_v16 = vpack.c.bf16 %v793_v15, %v792_v14 }
 0x1e3   : > { %3039 = vmatmul.mubr.bf16.vlgmr.msra.gmra.mrb[0].mxu1 %v795_v16 }
 0x1e4   : > { %3056 = vmatprep.mubr.msk.bf16.mxu1 %vm3582_vm0, %v3581_v17 }
 0x1e7   : > { %1016 = vmatmul.mubr.bf16.gmra.mrb[4].mxu0 %v795_v16 }
 0x1e8   : > { %3044 = vmatprep.mubr.msk.bf16.mxu0 %vm3582_vm0, %v3581_v17 }
 0x2b2   : > { %v1007_v25 = vpop.f32.mrb[0].mxu0 }
 0x2b3   : > { %v1009_v27 = vpop.f32.mrb[1].mxu0  ;;  %v1008_v30 = vadd.f32 %v1007_v25, %v833_v24 }
 0x2b4   : > { %v1011_v29 = vpop.f32.mrb[2].mxu0  ;;  %v1010_v33 = vadd.f32 %v1009_v27, %v837_v26 }
 0x2b5   : > { %v1012_v31 = vadd.f32 %v1011_v29, %v833_v24  ;;  %v1013_v32 = vpop.f32.mrb[3].mxu0 }
 0x2b6   : > { %v1014_v34 = vadd.f32 %v1013_v32, %v837_v26  ;;  %v3040_v35 = vpop.f32.mrb[0].mxu1 }
 0x2b7   : > { %v1075_v36 = vpack.c.bf16 %v1012_v31, %v1008_v30  ;;  %v1069_v37 = vadd.f32 %v3040_v35, %v841_v28  ;;  %v1060_v38 = vpop.f32.mrb[1].mxu1 }
 0x2b8   : > { %v1077_v39 = vpack.c.bf16 %v1014_v34, %v1010_v33  ;;  %v3041_v40 = vpop.f32.mrb[2].mxu1  ;;  %v1061_v44 = vadd.f32 %v1060_v38, %v841_v28 }
 0x2b9   : > { %v1072_v41 = vadd.f32 %v3041_v40, %v841_v28  ;;  %1200 = vrot.lane.b32.xlu1 %v1075_v36, %s3583_s11  ;;  %v1063_v42 = vpop.f32.mrb[3].mxu1 }
 0x2ba   : > { %v1064_v45 = vadd.f32 %v1063_v42, %v841_v28  ;;  %1203 = vrot.lane.b32.xlu0 %v1077_v39, %s3583_s11  ;;  %v1017_v46 = vpop.f32.mrb[4].mxu0  ;;  %v1086_v47 = vsel %vm1081_vm1, %v1077_v39, 0 }
 0x2bb   : > { %v3998_v48 = vpack.c.bf16 %v1072_v41, %v1069_v37  ;;  %v1019_v49 = vpop.f32.mrb[5].mxu0  ;;  %3043 = vmatpush3.bf16.xpose.msra.mxu0 %v1086_v47  ;;  %v1018_v52 = vadd.f32 %v1017_v46, %v833_v24 }
 0x2bc   : > { %v4000_v50 = vpack.c.bf16 %v1064_v45, %v1061_v44  ;;  %v1021_v51 = vpop.f32.mrb[6].mxu0  ;;  %3048 = vmatprep.subr.bf16.mxu0 %v3581_v17  ;;  %v1020_v55 = vadd.f32 %v1019_v49, %v837_v26 }
 0x2bd   : > { %v1022_v53 = vadd.f32 %v1021_v51, %v833_v24  ;;  %v1023_v54 = vpop.f32.mrb[7].mxu0 }
 0x2be   : > { %v1024_v56 = vadd.f32 %v1023_v54, %v837_v26 }
 0x2bf   : > { %v1076_v57 = vpack.c.bf16 %v1022_v53, %v1018_v52 }
 0x2c0   : > { %v1078_v58 = vpack.c.bf16 %v1024_v56, %v1020_v55 }
 0x2c2   : > { %3045 = vmatmul.mubr.msk.bf16.vlgmr.msra.gmra.mrb[8].mxu0 %vm1081_vm1, %v1075_v36  ;;  %1454 = vrot.lane.b32.xlu1 %v1078_v58, %s3583_s11  ;;  %v1338_v62 = vsel %vm1081_vm1, %v1078_v58, 0 }
 0x2c3   : > { %3049 = vmatpush3.bf16.msra.mxu0 %v4000_v50  ;;  %3050 = vmatprep.mubr.msk.bf16.mxu0 %vm3582_vm0, %v3581_v17 }
 0x2c4   : > { %3060 = vmatprep.subr.bf16.mxu0 %v3581_v17 }
 0x2c6   : > { %1451 = vrot.lane.b32.xlu1 %v1076_v57, %s3583_s11 }
 0x32b   : > { %v1201_v61 = vpop.permute.xlu1 %1200 }
 0x32c   : > { %v1204_v59 = vpop.permute.xlu0 %1203 }
 0x32d   : > { %v1209_v60 = vsel %vm1081_vm1, %v1204_v59, 0 }
 0x32e   : > { %3055 = vmatpush3.bf16.xpose.msra.mxu1 %v1209_v60 }
 0x32f   : > { %3066 = vmatprep.subr.bf16.mxu1 %v3581_v17 }
 0x334   : > { %v1455_v63 = vpop.permute.xlu1 %1454 }
 0x335   : > { %3057 = vmatmul.mubr.msk.bf16.vlgmr.msra.gmra.mrb[4].mxu1 %vm1081_vm1, %v1201_v61  ;;  %v1460_v0 = vsel %vm1081_vm1, %v1455_v63, 0 }
 0x336   : > { %3067 = vmatpush3.bf16.xpose.msra.mxu1 %v1338_v62  ;;  %3068 = vmatprep.mubr.msk.bf16.mxu1 %vm3582_vm0, %v3581_v17 }
 0x337   : > { %3078 = vmatprep.subr.bf16.mxu1 %v3581_v17 }
 0x338   : > { %v1452_v1 = vpop.permute.xlu1 %1451 }
 0x33d   : > { %3069 = vmatmul.mubr.msk.bf16.vlgmr.msra.gmra.mrb[8].mxu1 %vm1081_vm1, %v1076_v57 }
 0x33e   : > { %3079 = vmatpush3.bf16.xpose.msra.mxu1 %v1460_v0  ;;  %3080 = vmatprep.mubr.msk.bf16.mxu1 %vm3582_vm0, %v3581_v17 }
 0x345   : > { %3081 = vmatmul.mubr.msk.bf16.vlgmr.msra.gmra.mrb[12].mxu1 %vm1081_vm1, %v1452_v1 }
 0x395   : > { %v1122_v2 = vpop.f32.mrb[8].mxu0 }
 0x396   : > { %v3046_v3 = vpop.f32.mrb[9].mxu0  ;;  %v1130_v4 = vsel %vm1129_vm2, %v1122_v2, -inf }
 0x397   : > { %1131 = vmax.xlane.f32.xlu0 %v1130_v4  ;;  %v1125_v5 = vpop.f32.mrb[10].mxu0 }
 0x398   : > { %v3047_v6 = vpop.f32.mrb[11].mxu0  ;;  %v1133_v7 = vsel %vm1129_vm2, %v1125_v5, -inf }
 0x399   : > { %1134 = vmax.xlane.f32.xlu1 %v1133_v7 }
 0x408   : > { %v1245_v8 = vpop.f32.mrb[4].mxu1 }
 0x409   : > { %v3058_v9 = vpop.f32.mrb[5].mxu1  ;;  %v1252_v10 = vsel %vm1129_vm2, %v1245_v8, -inf }
 0x40a   : > { %1253 = vmax.xlane.f32.xlu0 %v1252_v10  ;;  %v1248_v11 = vpop.f32.mrb[6].mxu1 }
 0x40b   : > { %v3059_v12 = vpop.f32.mrb[7].mxu1  ;;  %v1255_v13 = vsel %vm1129_vm2, %v1248_v11, -inf }
 0x40e   : > { %1256 = vmax.xlane.f32.xlu0 %v1255_v13 }
 0x410   : > { %v1374_v14 = vpop.f32.mrb[8].mxu1 }
 0x411   : > { %v3070_v15 = vpop.f32.mrb[9].mxu1  ;;  %v1381_v16 = vsel %vm1129_vm2, %v1374_v14, -inf }
 0x412   : > { %1382 = vmax.xlane.f32.xlu0 %v1381_v16  ;;  %v1377_v18 = vpop.f32.mrb[10].mxu1 }
 0x413   : > { %v3071_v21 = vpop.f32.mrb[11].mxu1  ;;  %v1384_v24 = vsel %vm1129_vm2, %v1377_v18, -inf }
 0x414   : > { %1385 = vmax.xlane.f32.xlu1 %v1384_v24 }
 0x418   : > { %v1496_v25 = vpop.f32.mrb[12].mxu1 }
 0x419   : > { %v3082_v26 = vpop.f32.mrb[13].mxu1  ;;  %v1503_v27 = vsel %vm1129_vm2, %v1496_v25, -inf }
 0x41a   : > { %1504 = vmax.xlane.f32.xlu0 %v1503_v27  ;;  %v1499_v28 = vpop.f32.mrb[14].mxu1 }
 0x41b   : > { %v3083_v29 = vpop.f32.mrb[15].mxu1  ;;  %v1506_v30 = vsel %vm1129_vm2, %v1499_v28, -inf }
 0x41c   : > { %1507 = vmax.xlane.f32.xlu1 %v1506_v30 }
 0x424   : > { %v1132_v31 = vpop.xlane.xlu0 %1131 }
 0x425   : > { %v1136_v32 = vsub.f32 %v1122_v2, %v1132_v31 }
 0x426   : > { %v1135_v33 = vpop.xlane.xlu1 %1134 }
 0x427   : > { %v1138_v34 = vmul.f32 1.442695, %v1136_v32  ;;  %v1137_v35 = vsub.f32 %v1125_v5, %v1135_v33 }
 0x429   : > { %3333 = vpow2.f32 %v1138_v34  ;;  %v1140_v36 = vmul.f32 1.442695, %v1137_v35 }
 0x42b   : > { %3335 = vpow2.f32 %v1140_v36 }
 0x433   : > { %v3334_v37 = vpop.eup %3333 }
 0x434   : > { %v1142_v38 = vsel %vm1129_vm2, %v3334_v37, 0.0 }
 0x435   : > { %v3336_v39 = vpop.eup %3335  ;;  %1143 = vadd.xlane.f32.xlu0 %v1142_v38 }
 0x436   : > { %v1145_v40 = vsel %vm1129_vm2, %v3336_v39, 0.0 }
 0x437   : > { %1146 = vadd.xlane.f32.xlu1 %v1145_v40 }
 0x497   : > { %v1254_v41 = vpop.xlane.xlu0 %1253 }
 0x498   : > { %v1258_v42 = vsub.f32 %v1245_v8, %v1254_v41 }
 0x49a   : > { %v1260_v44 = vmul.f32 1.442695, %v1258_v42 }
 0x49b   : > { %v1257_v45 = vpop.xlane.xlu0 %1256 }
 0x49c   : > { %3337 = vpow2.f32 %v1260_v44  ;;  %v1259_v46 = vsub.f32 %v1248_v11, %v1257_v45 }
 0x49e   : > { %v1262_v47 = vmul.f32 1.442695, %v1259_v46 }
 0x49f   : > { %v1383_v49 = vpop.xlane.xlu0 %1382 }
 0x4a0   : > { %3339 = vpow2.f32 %v1262_v47  ;;  %v1387_v51 = vsub.f32 %v1374_v14, %v1383_v49  ;;  %v3237_v49 = vld [vmem:[%s3893_s25] sm:$0xff]  }
 0x4a1   : > { %v1386_v52 = vpop.xlane.xlu1 %1385  ;;  %3090 = vmatprep.subr.bf16.mxu1 %v3237_v49 }
 0x4a2   : > { %v1389_v53 = vmul.f32 1.442695, %v1387_v51  ;;  %v1388_v54 = vsub.f32 %v1377_v18, %v1386_v52  ;;  %3091 = vmatpush3.bf16.msra.mxu1 %v3237_v49  ;;  %v3239_v51 = vld [vmem:[%s3893_s25 + $0x10] sm:$0xff]   ;;  %v3240_v52 = vld [vmem:[%s3893_s25 + $0x18] sm:$0xff]  }
 0x4a4   : > { %3341 = vpow2.f32 %v1389_v53  ;;  %v1391_v55 = vmul.f32 1.442695, %v1388_v54  ;;  %v3241_v53 = vld [vmem:[%s3893_s25 + $0x20] sm:$0xff]  }
 0x4a6   : > { %v3338_v56 = vpop.eup %3337  ;;  %3343 = vpow2.f32 %v1391_v55 }
 0x4a7   : > { %v1505_v57 = vpop.xlane.xlu0 %1504  ;;  %v1264_v58 = vsel %vm1129_vm2, %v3338_v56, 0.0 }
 0x4a8   : > { %v1509_v59 = vsub.f32 %v1496_v25, %v1505_v57  ;;  %1265 = vadd.xlane.f32.xlu0 %v1264_v58  ;;  %v3242_v58 = vld [vmem:[%s3893_s25 + $0x28] sm:$0xff]  }
 0x4a9   : > { %v1508_v60 = vpop.xlane.xlu1 %1507 }
 0x4aa   : > { %v3340_v61 = vpop.eup %3339  ;;  %v1511_v62 = vmul.f32 1.442695, %v1509_v59  ;;  %v1510_v63 = vsub.f32 %v1499_v28, %v1508_v60  ;;  %v3243_v59 = vld [vmem:[%s3893_s25 + $0x30] sm:$0xff]   ;;  %v3244_v60 = vld [vmem:[%s3893_s25 + $0x38] sm:$0xff]  }
 0x4ab   : > { %v1267_v0 = vsel %vm1129_vm2, %v3340_v61, 0.0 }
 0x4ac   : > { %3345 = vpow2.f32 %v1511_v62  ;;  %v1513_v1 = vmul.f32 1.442695, %v1510_v63  ;;  %1268 = vadd.xlane.f32.xlu1 %v1267_v0 }
 0x4ae   : > { %v3342_v2 = vpop.eup %3341  ;;  %3347 = vpow2.f32 %v1513_v1 }
 0x4af   : > { %v1393_v3 = vsel %vm1129_vm2, %v3342_v2, 0.0 }
 0x4b0   : > { %v3344_v4 = vpop.eup %3343  ;;  %1394 = vadd.xlane.f32.xlu0 %v1393_v3 }
 0x4b1   : > { %v1396_v5 = vsel %vm1129_vm2, %v3344_v4, 0.0 }
 0x4b2   : > { %1397 = vadd.xlane.f32.xlu1 %v1396_v5 }
 0x4b6   : > { %v3346_v6 = vpop.eup %3345 }
 0x4b7   : > { %v1515_v7 = vsel %vm1129_vm2, %v3346_v6, 0.0 }
 0x4b8   : > { %v3348_v8 = vpop.eup %3347  ;;  %1516 = vadd.xlane.f32.xlu0 %v1515_v7 }
 0x4b9   : > { %v1518_v9 = vsel %vm1129_vm2, %v3348_v8, 0.0 }
 0x4ba   : > { %1519 = vadd.xlane.f32.xlu1 %v1518_v9 }
 0x4c2   : > { %v1144_v10 = vpop.xlane.xlu0 %1143 }
 0x4c3   : > { %3349 = vrcp.f32 %v1144_v10 }
 0x4c4   : > { %v1147_v11 = vpop.xlane.xlu1 %1146 }
 0x4c5   : > { %3351 = vrcp.f32 %v1147_v11 }
 0x4cb   : > { %1527 = vrot.lane.b32.xlu1 %v3998_v48, %s3583_s11 }
 0x4cd   : > { %v3350_v12 = vpop.eup %3349 }
 0x4ce   : > { %1276 = vrot.lane.b32.xlu0 %v4000_v50, %s3583_s11  ;;  %v1150_v14 = vmul.f32 %v3350_v12, %v3334_v37 }
 0x4cf   : > { %v3352_v13 = vpop.eup %3351 }
 0x4d0   : > { %v1151_v15 = vmul.f32 %v3352_v13, %v3336_v39 }
 0x4d2   : > { %v1152_v16 = vpack.c.bf16 %v1151_v15, %v1150_v14  ;;  %v2838_v15 = vld [vmem:[%s4330_s20] ss:$0 sm:$0xff] }
 0x4d4   : > { %3051 = vmatmul.mubr.msk.bf16.vlgmr.msra.gmra.mrb[12].mxu0 %vm1129_vm2, %v1152_v16 }
 0x4d5   : > { %3062 = vmatprep.mubr.msk.bf16.mxu0 %vm3582_vm0, %v3581_v17 }
 0x535   : > { %v1266_v18 = vpop.xlane.xlu0 %1265 }
 0x539   : > { %v1269_v21 = vpop.xlane.xlu1 %1268 }
 0x53a   : > { %3353 = vrcp.f32 %v1269_v21 }
 0x53b   : > { %3355 = vrcp.f32 %v1266_v18 }
 0x53d   : > { %v1395_v25 = vpop.xlane.xlu0 %1394 }
 0x53f   : > { %v1398_v24 = vpop.xlane.xlu1 %1397 }
 0x540   : > { %3357 = vrcp.f32 %v1398_v24 }
 0x541   : > { %3359 = vrcp.f32 %v1395_v25 }
 0x544   : > { %v3354_v26 = vpop.eup %3353 }
 0x545   : > { %v1517_v27 = vpop.xlane.xlu0 %1516  ;;  %v3356_v50 = vpop.eup %3355  ;;  %v1273_v28 = vmul.f32 %v3354_v26, %v3340_v61 }
 0x546   : > { %v1272_v30 = vmul.f32 %v3356_v50, %v3338_v56 }
 0x547   : > { %v1520_v29 = vpop.xlane.xlu1 %1519 }
 0x548   : > { %3361 = vrcp.f32 %v1520_v29  ;;  %v1274_v32 = vpack.c.bf16 %v1273_v28, %v1272_v30  ;;  %v3406_v29 = vld [vmem:[#allocation2 + $0x8] sm:$0xff] }
 0x549   : > { %v1277_v31 = vpop.permute.xlu0 %1276  ;;  %3363 = vrcp.f32 %v1517_v27  ;;  %v3405_v27 = vld [vmem:[#allocation2] sm:$0xff] }
 0x54a   : > { %3061 = vmatpush3.bf16.msra.mxu0 %v1277_v31  ;;  %v3358_v33 = vpop.eup %3357  ;;  %v3407_v31 = vld [vmem:[#allocation2 + $0x10] sm:$0xff] }
 0x54b   : > { %3072 = vmatprep.subr.bf16.mxu0 %v3581_v17  ;;  %v3360_v34 = vpop.eup %3359  ;;  %v1402_v35 = vmul.f32 %v3358_v33, %v3344_v4  ;;  %v1528_v39 = vpop.permute.xlu1 %1527 }
 0x54c   : > { %v1401_v36 = vmul.f32 %v3360_v34, %v3342_v2  ;;  %v3408_v34 = vld [vmem:[#allocation2 + $0x18] sm:$0xff] }
 0x54d   : > { %3063 = vmatmul.mubr.msk.bf16.vlgmr.msra.gmra.mrb[16].mxu0 %vm1129_vm2, %v1274_v32 }
 0x54e   : > { %3073 = vmatpush3.bf16.msra.mxu0 %v3998_v48  ;;  %3074 = vmatprep.mubr.msk.bf16.mxu0 %vm3582_vm0, %v3581_v17  ;;  %v1403_v37 = vpack.c.bf16 %v1402_v35, %v1401_v36 }
 0x54f   : > { %3084 = vmatprep.subr.bf16.mxu0 %v3581_v17 }
 0x552   : > { %v3362_v38 = vpop.eup %3361 }
 0x553   : > { %v3364_v40 = vpop.eup %3363  ;;  %v1524_v48 = vmul.f32 %v3362_v38, %v3348_v8 }
 0x554   : > { %v1523_v41 = vmul.f32 %v3364_v40, %v3346_v6 }
 0x555   : > { %3075 = vmatmul.mubr.msk.bf16.vlgmr.msra.gmra.mrb[20].mxu0 %vm1129_vm2, %v1403_v37 }
 0x556   : > { %3085 = vmatpush3.bf16.msra.mxu0 %v1528_v39  ;;  %3086 = vmatprep.mubr.msk.bf16.mxu0 %vm3582_vm0, %v3581_v17  ;;  %v1525_v42 = vpack.c.bf16 %v1524_v48, %v1523_v41  ;;  %v3238_v17 = vld [vmem:[%s3893_s25 + $0x8] sm:$0xff]   ;;  %s4331_s25 = sld [smem:[#allocation19_spill]] }
 0x557   : > { %3092 = vmatprep.subr.bf16.mxu1 %v3238_v17 }
 0x558   : > { %3093 = vmatpush3.bf16.msra.mxu1 %v3238_v17 }
 0x559   : > { %3094 = vmatprep.subr.bf16.mxu1 %v3239_v51 }
 0x55c   : > { %3095 = vmatpush3.bf16.msra.mxu1 %v3239_v51  ;;  %v3245_v36 = vld [vmem:[%s4331_s25] ss:$16 sps:$4 sm:$0xff]   ;;  %v3247_v37 = vld [vmem:[%s4331_s25 + $0x4] ss:$16 sps:$4 sm:$0xff]   ;;  %v3248_v38 = vld [vmem:[%s4331_s25 + $0x8] ss:$16 sps:$4 sm:$0xff]  }
 0x55d   : > { %3087 = vmatmul.mubr.msk.bf16.vlgmr.msra.gmra.mrb[24].mxu0 %vm1129_vm2, %v1525_v42  ;;  %3096 = vmatprep.subr.bf16.mxu1 %v3240_v52  ;;  %v3250_v39 = vld [vmem:[%s4331_s25 + $0xc] ss:$16 sps:$4 sm:$0xff]   ;;  %v3253_v40 = vld [vmem:[%s4331_s25 + $0x24] ss:$16 sps:$4 sm:$0xff]   ;;  %v3251_v41 = vld [vmem:[%s4331_s25 + $0x20] ss:$16 sps:$4 sm:$0xff]  }
 0x55e   : > { %2028 = vmatprep.mubr.bf16.mxu0 %v3580_v43  ;;  %1996 = vmatprep.subr.bf16.mxu0 %v3247_v37  ;;  %v3256_v48 = vld [vmem:[%s4331_s25 + $0x2c] ss:$16 sps:$4 sm:$0xff]   ;;  %v3254_v42 = vld [vmem:[%s4331_s25 + $0x28] ss:$16 sps:$4 sm:$0xff]  }
 0x55f   : > { %1997 = vmatpush1.bf16.msra.mxu0 %v3245_v36 }
 0x560   : > { %3097 = vmatpush3.bf16.msra.mxu1 %v3240_v52  ;;  %1998 = vmatprep.subr.bf16.mxu0 %v3253_v40 }
 0x561   : > { %3098 = vmatprep.subr.bf16.mxu1 %v3241_v53 }
 0x563   : > { %1999 = vmatpush1.bf16.msra.mxu0 %v3251_v41  ;;  %v2847_v41 = vld [vmem:[%s692_s21] ss:$0 sm:$0xff] }
 0x564   : > { %3099 = vmatpush3.bf16.msra.mxu1 %v3241_v53 }
 0x565   : > { %3100 = vmatprep.subr.bf16.mxu1 %v3242_v58 }
 0x568   : > { %3101 = vmatpush3.bf16.msra.mxu1 %v3242_v58 }
 0x569   : > { %3102 = vmatprep.subr.bf16.mxu1 %v3243_v59 }
 0x56c   : > { %3103 = vmatpush3.bf16.msra.mxu1 %v3243_v59 }
 0x56d   : > { %3104 = vmatprep.subr.bf16.mxu1 %v3244_v60 }
 0x570   : > { %3105 = vmatpush3.bf16.msra.mxu1 %v3244_v60 }
 0x571   : > { %2049 = vmatprep.subr.bf16.mxu1 %v3250_v39 }
 0x5a7   : > { %v1190_v44 = vpop.f32.mrb[12].mxu0 }
 0x5a8   : > { %1197 = vst.msk [vmem:[#allocation3] sm:$0xff] %vm1081_vm1, %v1190_v44  ;;  %v3052_v45 = vpop.f32.mrb[13].mxu0 }
 0x5a9   : > { %v1193_v46 = vpop.f32.mrb[14].mxu0 }
 0x5aa   : > { %1198 = vst.msk [vmem:[#allocation3 + $0x8] sm:$0xff] %vm1081_vm1, %v1193_v46  ;;  %v3053_v47 = vpop.f32.mrb[15].mxu0 }
 0x620   : > { %v1316_v54 = vpop.f32.mrb[16].mxu0 }
 0x621   : > { %1325 = vrot.lane.b32.xlu1 %v1316_v54, %s3583_s11  ;;  %v3064_v55 = vpop.f32.mrb[17].mxu0 }
 0x622   : > { %v1319_v56 = vpop.f32.mrb[18].mxu0 }
 0x623   : > { %v3065_v57 = vpop.f32.mrb[19].mxu0 }
 0x625   : > { %1327 = vrot.lane.b32.xlu1 %v1319_v56, %s3583_s11 }
 0x628   : > { %v1441_v61 = vpop.f32.mrb[20].mxu0 }
 0x629   : > { %1448 = vst.msk [vmem:[#allocation3 + $0x10] sm:$0xff] %vm1081_vm1, %v1441_v61  ;;  %v3076_v62 = vpop.f32.mrb[21].mxu0  ;;  %v3259_v61 = vld [vmem:[%s4331_s25 + $0x44] ss:$16 sps:$4 sm:$0xff]  }
 0x62a   : > { %v1444_v63 = vpop.f32.mrb[22].mxu0  ;;  %v3262_v62 = vld [vmem:[%s4331_s25 + $0x4c] ss:$16 sps:$4 sm:$0xff]   ;;  %2000 = vmatprep.subr.bf16.mxu0 %v3259_v61 }
 0x62b   : > { %1449 = vst.msk [vmem:[#allocation3 + $0x18] sm:$0xff] %vm1081_vm1, %v1444_v63  ;;  %v3077_v0 = vpop.f32.mrb[23].mxu0  ;;  %v3257_v63 = vld [vmem:[%s4331_s25 + $0x40] ss:$16 sps:$4 sm:$0xff]  }
 0x62c   : > { %v3260_v0 = vld [vmem:[%s4331_s25 + $0x48] ss:$16 sps:$4 sm:$0xff]   ;;  %2001 = vmatpush1.bf16.msra.mxu0 %v3257_v63  ;;  %v3293_v63 = vld [vmem:[%s3918_s24 + $0x40] sm:$0xff]  }
 0x630   : > { %v1567_v1 = vpop.f32.mrb[24].mxu0 }
 0x631   : > { %1576 = vrot.lane.b32.xlu0 %v1567_v1, %s3583_s11  ;;  %v3088_v2 = vpop.f32.mrb[25].mxu0  ;;  %v3265_v1 = vld [vmem:[%s4331_s25 + $0x64] ss:$16 sps:$4 sm:$0xff]  }
 0x632   : > { %v1570_v3 = vpop.f32.mrb[26].mxu0  ;;  %v3268_v2 = vld [vmem:[%s4331_s25 + $0x6c] ss:$16 sps:$4 sm:$0xff]   ;;  %2002 = vmatprep.subr.bf16.mxu0 %v3265_v1  ;;  %v3296_v1 = vld [vmem:[%s3918_s24 + $0x80] sm:$0xff]  }
 0x633   : > { %1578 = vrot.lane.b32.xlu1 %v1570_v3, %s3583_s11  ;;  %v3089_v4 = vpop.f32.mrb[27].mxu0  ;;  %v3263_v3 = vld [vmem:[%s4331_s25 + $0x60] ss:$16 sps:$4 sm:$0xff]  }
 0x634   : > { %v3266_v4 = vld [vmem:[%s4331_s25 + $0x68] ss:$16 sps:$4 sm:$0xff]   ;;  %2003 = vmatpush1.bf16.msra.mxu0 %v3263_v3 }
 0x635   : > { %v3299_v3 = vld [vmem:[%s3918_s24 + $0x8] sm:$0xff]  }
 0x693   : > { %v1326_v5 = vpop.permute.xlu1 %1325 }
 0x694   : > { %1332 = vst.msk [vmem:[#allocation3] sm:$0xff] %vm1331_vm3, %v1326_v5  ;;  %v3271_v5 = vld [vmem:[%s4331_s25 + $0x84] ss:$16 sps:$4 sm:$0xff]  }
 0x695   : > { %2004 = vmatprep.subr.bf16.mxu0 %v3271_v5  ;;  %v3301_v5 = vld [vmem:[%s3918_s24 + $0x50] sm:$0xff]  }
 0x697   : > { %v1328_v6 = vpop.permute.xlu1 %1327 }
 0x698   : > { %1333 = vst.msk [vmem:[#allocation3 + $0x8] sm:$0xff] %vm1331_vm3, %v1328_v6  ;;  %v3274_v6 = vld [vmem:[%s4331_s25 + $0x8c] ss:$16 sps:$4 sm:$0xff]  }
 0x69b   : > { %v1584_v7 = vld [vmem:[#allocation3] sm:$0xff] }
 0x69f   : > { %v1585_v8 = vld [vmem:[#allocation3 + $0x8] sm:$0xff] }
 0x6a0   : > { %v1588_v9 = vpack.c.bf16 %v1585_v8, %v1584_v7  ;;  %v3269_v7 = vld [vmem:[%s4331_s25 + $0x80] ss:$16 sps:$4 sm:$0xff]   ;;  %v3272_v8 = vld [vmem:[%s4331_s25 + $0x88] ss:$16 sps:$4 sm:$0xff]  }
 0x6a1   : > { %2005 = vmatpush1.bf16.msra.mxu0 %v3269_v7  ;;  %v3303_v7 = vld [vmem:[%s3918_s24 + $0x10] sm:$0xff]  }
 0x6a2   : > { %3106 = vmatprep.mubr.bf16.mxu1 %v1588_v9  ;;  %v3277_v9 = vld [vmem:[%s4331_s25 + $0xa4] ss:$16 sps:$4 sm:$0xff]  }
 0x6a3   : > { %v1577_v10 = vpop.permute.xlu0 %1576  ;;  %2006 = vmatprep.subr.bf16.mxu0 %v3277_v9  ;;  %v3305_v9 = vld [vmem:[%s3918_s24 + $0x58] sm:$0xff]  }
 0x6a4   : > { %1582 = vst.msk [vmem:[#allocation3 + $0x10] sm:$0xff] %vm1331_vm3, %v1577_v10  ;;  %v3280_v10 = vld [vmem:[%s4331_s25 + $0xac] ss:$16 sps:$4 sm:$0xff]  }
 0x6a5   : > { %v1579_v11 = vpop.permute.xlu1 %1578 }
 0x6a6   : > { %1583 = vst.msk [vmem:[#allocation3 + $0x18] sm:$0xff] %vm1331_vm3, %v1579_v11  ;;  %v3275_v11 = vld [vmem:[%s4331_s25 + $0xa0] ss:$16 sps:$4 sm:$0xff]  }
 0x6a7   : > { %2007 = vmatpush1.bf16.msra.mxu0 %v3275_v11  ;;  %v3307_v11 = vld [vmem:[%s3918_s24 + $0x18] sm:$0xff]  }
 0x6ab   : > { %v1586_v12 = vld [vmem:[#allocation3 + $0x10] sm:$0xff] }
 0x6ad   : > { %v1587_v13 = vld [vmem:[#allocation3 + $0x18] sm:$0xff] }
 0x6ae   : > { %v1589_v14 = vpack.c.bf16 %v1587_v13, %v1586_v12  ;;  %v3278_v12 = vld [vmem:[%s4331_s25 + $0xa8] ss:$16 sps:$4 sm:$0xff]   ;;  %v3283_v13 = vld [vmem:[%s4331_s25 + $0xc4] ss:$16 sps:$4 sm:$0xff]  }
 0x6af   : > { %2008 = vmatprep.subr.bf16.mxu0 %v3283_v13  ;;  %v3309_v13 = vld [vmem:[%s3918_s24 + $0x60] sm:$0xff]  }
 0x6b0   : > { %3107 = vmatmul.mubr.bf16.vlgmr.msra.gmra.mrb[16].mxu1 %v1589_v14  ;;  %v3286_v14 = vld [vmem:[%s4331_s25 + $0xcc] ss:$16 sps:$4 sm:$0xff]  }
 0x6b1   : > { %2081 = vmatprep.mubr.bf16.mxu1 %v3580_v43  ;;  %2050 = vmatpush1.bf16.msra.mxu1 %v3248_v38 }
 0x6b2   : > { %2051 = vmatprep.subr.bf16.mxu1 %v3256_v48 }
 0x6b5   : > { %2052 = vmatpush1.bf16.msra.mxu1 %v3254_v42 }
 0x6b6   : > { %2053 = vmatprep.subr.bf16.mxu1 %v3262_v62 }
 0x6b9   : > { %2054 = vmatpush1.bf16.msra.mxu1 %v3260_v0  ;;  %v3295_v0 = vld [vmem:[%s3918_s24] sm:$0xff]  }
 0x6ba   : > { %2055 = vmatprep.subr.bf16.mxu1 %v3268_v2  ;;  %v3298_v2 = vld [vmem:[%s3918_s24 + $0xc8] sm:$0xff]  }
 0x6bd   : > { %2056 = vmatpush1.bf16.msra.mxu1 %v3266_v4  ;;  %v3300_v4 = vld [vmem:[%s3918_s24 + $0x88] sm:$0xff]  }
 0x6be   : > { %2057 = vmatprep.subr.bf16.mxu1 %v3274_v6  ;;  %v3302_v6 = vld [vmem:[%s3918_s24 + $0xd0] sm:$0xff]  }
 0x6c1   : > { %2058 = vmatpush1.bf16.msra.mxu1 %v3272_v8  ;;  %v3304_v8 = vld [vmem:[%s3918_s24 + $0x90] sm:$0xff]  }
 0x6c2   : > { %2059 = vmatprep.subr.bf16.mxu1 %v3280_v10  ;;  %v3306_v10 = vld [vmem:[%s3918_s24 + $0xd8] sm:$0xff]  }
 0x6c5   : > { %2060 = vmatpush1.bf16.msra.mxu1 %v3278_v12  ;;  %v3308_v12 = vld [vmem:[%s3918_s24 + $0x98] sm:$0xff]  }
 0x6c6   : > { %2061 = vmatprep.subr.bf16.mxu1 %v3286_v14  ;;  %v3310_v14 = vld [vmem:[%s3918_s24 + $0xe0] sm:$0xff]  }
 0x783   : > { %v3108_v16 = vpop.f32.mrb[16].mxu1 }
 0x784   : > { %v1695_v18 = vpop.f32.mrb[17].mxu1  ;;  %v1704_v26 = vadd.f32 %v3108_v16, %v2838_v15  ;;  %v3284_v16 = vld [vmem:[%s4331_s25 + $0xc8] ss:$16 sps:$4 sm:$0xff]  }
 0x785   : > { %v1696_v21 = vadd.f32 %v2838_v15, %v1695_v18  ;;  %v3109_v24 = vpop.f32.mrb[18].mxu1  ;;  %v3289_v18 = vld [vmem:[%s4331_s25 + $0xe4] ss:$16 sps:$4 sm:$0xff]   ;;  %2062 = vmatpush1.bf16.msra.mxu1 %v3284_v16 }
 0x786   : > { %v1698_v25 = vpop.f32.mrb[19].mxu1  ;;  %v4083_v32 = vadd.f32 %v3407_v31, %v1704_v26  ;;  %v1707_v33 = vadd.f32 %v3109_v24, %v2838_v15  ;;  %v3287_v24 = vld [vmem:[%s4331_s25 + $0xe0] ss:$16 sps:$4 sm:$0xff]  }
 0x787   : > { %v4078_v50 = vadd.f32 %v3405_v27, %v1696_v21  ;;  %v1699_v28 = vadd.f32 %v2838_v15, %v1698_v25  ;;  %v3281_v15 = vld [vmem:[%s4331_s25 + $0xc0] ss:$16 sps:$4 sm:$0xff]   ;;  %v3292_v21 = vld [vmem:[%s4331_s25 + $0xec] ss:$16 sps:$4 sm:$0xff]   ;;  %v3290_v25 = vld [vmem:[%s4331_s25 + $0xe8] ss:$16 sps:$4 sm:$0xff]  }
 0x788   : > { %v4087_v35 = vadd.f32 %v3408_v34, %v1707_v33  ;;  %2009 = vmatpush1.bf16.msra.mxu0 %v3281_v15  ;;  %2063 = vmatprep.subr.bf16.mxu1 %v3292_v21  ;;  %v3311_v15 = vld [vmem:[%s3918_s24 + $0x20] sm:$0xff]   ;;  %v3314_v21 = vld [vmem:[%s3918_s24 + $0xe8] sm:$0xff]  }
 0x789   : > { %v4080_v30 = vadd.f32 %v3406_v29, %v1699_v28  ;;  %1716 = vadd.xlane.f32.xlu0 %v4078_v50  ;;  %2010 = vmatprep.subr.bf16.mxu0 %v3289_v18  ;;  %v3312_v16 = vld [vmem:[%s3918_s24 + $0xa0] sm:$0xff]   ;;  %v3313_v18 = vld [vmem:[%s3918_s24 + $0x68] sm:$0xff]  }
 0x78a   : > { %2064 = vmatpush1.bf16.msra.mxu1 %v3290_v25  ;;  %v3316_v25 = vld [vmem:[%s3918_s24 + $0xa8] sm:$0xff]  }
 0x78b   : > { %1718 = vadd.xlane.f32.xlu1 %v4080_v30 }
 0x78c   : > { %2011 = vmatpush1.bf16.msra.mxu0 %v3287_v24  ;;  %v3315_v24 = vld [vmem:[%s3918_s24 + $0x28] sm:$0xff]  }
 0x78d   : > { %1720 = vadd.xlane.f32.xlu0 %v4083_v32  ;;  %2966 = vmatprep.subr.bf16.mxu0 %v3293_v63 }
 0x791   : > { %1722 = vadd.xlane.f32.xlu0 %v4087_v35 }
 0x816   : > { %v1717_v44 = vpop.xlane.xlu0 %1716 }
 0x817   : > { %v1724_v45 = vmul.f32 0.0078125, %v1717_v44 }
 0x818   : > { %v1719_v46 = vpop.xlane.xlu1 %1718 }
 0x819   : > { %v4099_v47 = vsub.f32 %v4078_v50, %v1724_v45  ;;  %v1725_v49 = vmul.f32 0.0078125, %v1719_v46 }
 0x81a   : > { %v1721_v17 = vpop.xlane.xlu0 %1720 }
 0x81b   : > { %v4102_v51 = vsub.f32 %v4080_v30, %v1725_v49  ;;  %v1726_v52 = vmul.f32 0.0078125, %v1721_v17  ;;  %v1732_v53 = vmul.f32 %v4099_v47, %v4099_v47  ;;  %v2848_v17 = vld [vmem:[%s695_s15] ss:$0 sm:$0xff] }
 0x81d   : > { %v4107_v54 = vsub.f32 %v4083_v32, %v1726_v52  ;;  %1736 = vadd.xlane.f32.xlu0 %v1732_v53  ;;  %v1733_v55 = vmul.f32 %v4102_v51, %v4102_v51 }
 0x81e   : > { %v1723_v56 = vpop.xlane.xlu0 %1722 }
 0x81f   : > { %v1727_v57 = vmul.f32 0.0078125, %v1723_v56  ;;  %1738 = vadd.xlane.f32.xlu1 %v1733_v55  ;;  %v1734_v58 = vmul.f32 %v4107_v54, %v4107_v54 }
 0x821   : > { %v4114_v59 = vsub.f32 %v4087_v35, %v1727_v57  ;;  %1740 = vadd.xlane.f32.xlu0 %v1734_v58 }
 0x823   : > { %v1735_v60 = vmul.f32 %v4114_v59, %v4114_v59 }
 0x825   : > { %1742 = vadd.xlane.f32.xlu1 %v1735_v60 }
 0x8aa   : > { %v1737_v26 = vpop.xlane.xlu0 %1736 }
 0x8ab   : > { %v1744_v27 = vmul.f32 0.0078125, %v1737_v26  ;;  %v3317_v26 = vld [vmem:[%s3918_s24 + $0x70] sm:$0xff]  }
 0x8ac   : > { %v1739_v28 = vpop.xlane.xlu1 %1738 }
 0x8ad   : > { %v1748_v29 = vadd.f32 1e-05, %v1744_v27  ;;  %v1745_v31 = vmul.f32 0.0078125, %v1739_v28  ;;  %v3318_v27 = vld [vmem:[%s3918_s24 + $0xf0] sm:$0xff]  }
 0x8ae   : > { %v1741_v33 = vpop.xlane.xlu0 %1740  ;;  %v3319_v28 = vld [vmem:[%s3918_s24 + $0x30] sm:$0xff]  }
 0x8af   : > { %3365 = vrsqrt.f32 %v1748_v29  ;;  %v1749_v34 = vadd.f32 1e-05, %v1745_v31  ;;  %v1746_v36 = vmul.f32 0.0078125, %v1741_v33  ;;  %v3320_v29 = vld [vmem:[%s3918_s24 + $0xb0] sm:$0xff]   ;;  %v3321_v31 = vld [vmem:[%s3918_s24 + $0x78] sm:$0xff]  }
 0x8b0   : > { %v3322_v33 = vld [vmem:[%s3918_s24 + $0xf8] sm:$0xff]  }
 0x8b1   : > { %3367 = vrsqrt.f32 %v1749_v34  ;;  %v1750_v37 = vadd.f32 1e-05, %v1746_v36  ;;  %v3323_v34 = vld [vmem:[%s3918_s24 + $0x38] sm:$0xff]  }
 0x8b2   : > { %v1743_v38 = vpop.xlane.xlu1 %1742  ;;  %v3324_v36 = vld [vmem:[%s3918_s24 + $0xb8] sm:$0xff]  }
 0x8b3   : > { %3369 = vrsqrt.f32 %v1750_v37  ;;  %v1747_v39 = vmul.f32 0.0078125, %v1743_v38  ;;  %v1814_v37 = vld [vmem:[%s3911_s6] sm:$0xf]  ;;  %v1830_v38 = vsub.s32 3, %v3983_v19 }
 0x8b5   : > { %v1751_v40 = vadd.f32 1e-05, %v1747_v39  ;;  %v1819_v39 = vrot.slane %v1814_v37, %v832_v20 }
 0x8b7   : > { %3371 = vrsqrt.f32 %v1751_v40  ;;  %v1827_v40 = vrot.slane %v1814_v37, %v840_v23 }
 0x8b9   : > { %v3366_v48 = vpop.eup %3365 }
 0x8ba   : > { %v1756_v42 = vmul.f32 %v3366_v48, %v4099_v47 }
 0x8bb   : > { %v3368_v44 = vpop.eup %3367 }
 0x8bc   : > { %v1757_v45 = vmul.f32 %v3368_v44, %v4102_v51  ;;  %v1766_v46 = vmul.f32 %v2847_v41, %v1756_v42  ;;  %v1823_v42 = vrot.slane %v1814_v37, %v836_v22  ;;  %v1831_v44 = vrot.slane %v1814_v37, %v1830_v38 }
 0x8bd   : > { %v3370_v49 = vpop.eup %3369 }
 0x8be   : > { %v1767_v52 = vmul.f32 %v2847_v41, %v1757_v45  ;;  %v1776_v53 = vadd.f32 %v2848_v17, %v1766_v46  ;;  %v1758_v56 = vmul.f32 %v3370_v49, %v4107_v54 }
 0x8c0   : > { %v1777_v55 = vadd.f32 %v2848_v17, %v1767_v52  ;;  %v1768_v58 = vmul.f32 %v2847_v41, %v1758_v56 }
 0x8c1   : > { %v3372_v57 = vpop.eup %3371 }
 0x8c2   : > { %v1780_v47 = vpack.c.bf16 %v1777_v55, %v1776_v53  ;;  %v1759_v51 = vmul.f32 %v3372_v57, %v4114_v59  ;;  %v1778_v54 = vadd.f32 %v2848_v17, %v1768_v58  ;;  %v3294_v59 = vld [vmem:[%s3918_s24 + $0xc0] sm:$0xff]  }
 0x8c3   : > { %2994 = vmatprep.subr.bf16.mxu1 %v3294_v59 }
 0x8c4   : > { %2029 = vmatmul.mubr.bf16.vlgmr.msra.gmra.mrb[28].mxu0 %v1780_v47  ;;  %2082 = vmatmul.mubr.bf16.vlgmr.msra.gmra.mrb[20].mxu1 %v1780_v47  ;;  %v1769_v60 = vmul.f32 %v2847_v41, %v1759_v51 }
 0x8c5   : > { %2038 = vmatprep.mubr.bf16.mxu0 %v3580_v43  ;;  %2091 = vmatprep.mubr.bf16.mxu1 %v3580_v43  ;;  %v3297_v43 = vld [vmem:[%s3918_s24 + $0x48] sm:$0xff]  }
 0x8c6   : > { %v1779_v61 = vadd.f32 %v2848_v17, %v1769_v60  ;;  %2967 = vmatpush3.bf16.msra.mxu0 %v3295_v0  ;;  %2995 = vmatpush3.bf16.msra.mxu1 %v3296_v1 }
 0x8c7   : > { %2968 = vmatprep.subr.bf16.mxu0 %v3297_v43  ;;  %2996 = vmatprep.subr.bf16.mxu1 %v3298_v2 }
 0x8c8   : > { %v1781_v62 = vpack.c.bf16 %v1779_v61, %v1778_v54 }
 0x8ca   : > { %2969 = vmatpush3.bf16.msra.mxu0 %v3299_v3  ;;  %2997 = vmatpush3.bf16.msra.mxu1 %v3300_v4 }
 0x8cb   : > { %2970 = vmatprep.subr.bf16.mxu0 %v3301_v5  ;;  %2998 = vmatprep.subr.bf16.mxu1 %v3302_v6 }
 0x8cc   : > { %2039 = vmatmul.mubr.bf16.gmra.mrb[32].mxu0 %v1781_v62  ;;  %2092 = vmatmul.mubr.bf16.gmra.mrb[24].mxu1 %v1781_v62 }
 0x8ce   : > { %2971 = vmatpush3.bf16.msra.mxu0 %v3303_v7  ;;  %2999 = vmatpush3.bf16.msra.mxu1 %v3304_v8 }
 0x8cf   : > { %2972 = vmatprep.subr.bf16.mxu0 %v3305_v9  ;;  %3000 = vmatprep.subr.bf16.mxu1 %v3306_v10 }
 0x8d2   : > { %2973 = vmatpush3.bf16.msra.mxu0 %v3307_v11  ;;  %3001 = vmatpush3.bf16.msra.mxu1 %v3308_v12 }
 0x8d3   : > { %2974 = vmatprep.subr.bf16.mxu0 %v3309_v13  ;;  %3002 = vmatprep.subr.bf16.mxu1 %v3310_v14 }
 0x8d6   : > { %2975 = vmatpush3.bf16.msra.mxu0 %v3311_v15  ;;  %3003 = vmatpush3.bf16.msra.mxu1 %v3312_v16 }
 0x8d7   : > { %2976 = vmatprep.subr.bf16.mxu0 %v3313_v18  ;;  %3004 = vmatprep.subr.bf16.mxu1 %v3314_v21 }
 0x8da   : > { %2977 = vmatpush3.bf16.msra.mxu0 %v3315_v24  ;;  %3005 = vmatpush3.bf16.msra.mxu1 %v3316_v25 }
 0x8db   : > { %2978 = vmatprep.subr.bf16.mxu0 %v3317_v26  ;;  %3006 = vmatprep.subr.bf16.mxu1 %v3318_v27 }
 0x8de   : > { %2979 = vmatpush3.bf16.msra.mxu0 %v3319_v28  ;;  %3007 = vmatpush3.bf16.msra.mxu1 %v3320_v29 }
 0x8df   : > { %2980 = vmatprep.subr.bf16.mxu0 %v3321_v31  ;;  %3008 = vmatprep.subr.bf16.mxu1 %v3322_v33 }
 0x8e2   : > { %2981 = vmatpush3.bf16.msra.mxu0 %v3323_v34  ;;  %3009 = vmatpush3.bf16.msra.mxu1 %v3324_v36 }
 0x997   : > { %v2030_v48 = vpop.f32.mrb[28].mxu0  ;;  %v2083_v41 = vpop.f32.mrb[20].mxu1 }
 0x998   : > { %v2032_v45 = vpop.f32.mrb[29].mxu0  ;;  %v2085_v46 = vpop.f32.mrb[21].mxu1  ;;  %v2031_v52 = vadd.f32 %v2030_v48, %v1819_v39  ;;  %v2084_v53 = vadd.f32 %v2083_v41, %v1827_v40 }
 0x999   : > { %v2034_v49 = vpop.f32.mrb[30].mxu0  ;;  %v2087_v17 = vpop.f32.mrb[22].mxu1  ;;  %v2033_v20 = vadd.f32 %v2032_v45, %v1823_v42  ;;  %v2086_v51 = vadd.f32 %v2085_v46, %v1831_v44 }
 0x99a   : > { %v2035_v55 = vadd.f32 %v2034_v49, %v1819_v39  ;;  %v2088_v56 = vadd.f32 %v2087_v17, %v1827_v40  ;;  %v2036_v57 = vpop.f32.mrb[31].mxu0  ;;  %v2089_v47 = vpop.f32.mrb[23].mxu1 }
 0x99b   : > { %v2037_v58 = vadd.f32 %v2036_v57, %v1823_v42  ;;  %v2090_v23 = vadd.f32 %v2089_v47, %v1831_v44 }
 0x99c   : > { %v4198_v60 = vpack.c.bf16 %v2035_v55, %v2031_v52  ;;  %v4200_v61 = vpack.c.bf16 %v2088_v56, %v2084_v53 }
 0x99d   : > { %v4202_v19 = vpack.c.bf16 %v2037_v58, %v2033_v20  ;;  %v4204_v22 = vpack.c.bf16 %v2090_v23, %v2086_v51 }
 0x99e   : > { %v2881_v54 = vmul.bf16 3218784218, %v4198_v60  ;;  %v2883_v62 = vmul.bf16 3218784218, %v4200_v61 }
 0x99f   : > { %v2882_v63 = vmul.bf16 3218784218, %v4202_v19  ;;  %v2884_v59 = vmul.bf16 3218784218, %v4204_v22  ;;  %v2040_v0 = vpop.f32.mrb[32].mxu0  ;;  %v2093_v1 = vpop.f32.mrb[24].mxu1 }
 0x9a0   : > { %v2127_v43 = vmul.bf16 1069105081, %v2881_v54  ;;  %v2133_v2 = vmul.bf16 1069105081, %v2883_v62  ;;  %v2042_v3 = vpop.f32.mrb[33].mxu0  ;;  %v2095_v4 = vpop.f32.mrb[25].mxu1  ;;  %v2041_v7 = vadd.f32 %v2040_v0, %v1819_v39  ;;  %v2094_v8 = vadd.f32 %v2093_v1, %v1827_v40 }
 0x9a1   : > { %v2130_v5 = vmul.bf16 1069105081, %v2882_v63  ;;  %v2136_v6 = vmul.bf16 1069105081, %v2884_v59  ;;  %v2044_v9 = vpop.f32.mrb[34].mxu0  ;;  %v2097_v10 = vpop.f32.mrb[26].mxu1  ;;  %v2043_v11 = vadd.f32 %v2042_v3, %v1823_v42  ;;  %v2096_v16 = vadd.f32 %v2095_v4, %v1831_v44 }
 0x9a2   : > { %3373 = vpow.bf16 %v2127_v43  ;;  %v2045_v12 = vadd.f32 %v2044_v9, %v1819_v39  ;;  %v2098_v13 = vadd.f32 %v2097_v10, %v1827_v40  ;;  %v2046_v14 = vpop.f32.mrb[35].mxu0  ;;  %v2099_v15 = vpop.f32.mrb[27].mxu1 }
 0x9a3   : > { %3375 = vpow.bf16 %v2133_v2  ;;  %v2047_v18 = vadd.f32 %v2046_v14, %v1823_v42  ;;  %v2100_v21 = vadd.f32 %v2099_v15, %v1831_v44 }
 0x9a4   : > { %3377 = vpow.bf16 %v2130_v5  ;;  %v4210_v24 = vpack.c.bf16 %v2045_v12, %v2041_v7  ;;  %v4212_v25 = vpack.c.bf16 %v2098_v13, %v2094_v8  ;;  %v2889_v13 = vld [vmem:[%s702_s3] ss:$0 sm:$0xff] }
 0x9a5   : > { %3379 = vpow.bf16 %v2136_v6  ;;  %v2107_v26 = vpack.c.bf16 %v2047_v18, %v2043_v11  ;;  %v2109_v27 = vpack.c.bf16 %v2100_v21, %v2096_v16 }
 0x9a6   : > { %v2885_v28 = vmul.bf16 3218784218, %v4210_v24  ;;  %v2887_v29 = vmul.bf16 3218784218, %v4212_v25 }
 0x9a7   : > { %v2886_v31 = vmul.bf16 3218784218, %v2107_v26  ;;  %v2888_v33 = vmul.bf16 3218784218, %v2109_v27 }
 0x9a8   : > { %v2139_v34 = vmul.bf16 1069105081, %v2885_v28  ;;  %v2145_v36 = vmul.bf16 1069105081, %v2887_v29 }
 0x9a9   : > { %v2142_v37 = vmul.bf16 1069105081, %v2886_v31  ;;  %v2148_v38 = vmul.bf16 1069105081, %v2888_v33 }
 0x9aa   : > { %3381 = vpow.bf16 %v2139_v34 }
 0x9ab   : > { %3383 = vpow.bf16 %v2145_v36 }
 0x9ac   : > { %3385 = vpow.bf16 %v2142_v37 }
 0x9ad   : > { %v3374_v39 = vpop.eup %3373  ;;  %3387 = vpow.bf16 %v2148_v38 }
 0x9ae   : > { %v3376_v40 = vpop.eup %3375  ;;  %v2150_v48 = vadd.bf16 1065369472, %v3374_v39 }
 0x9af   : > { %v3378_v41 = vpop.eup %3377  ;;  %v2152_v42 = vadd.bf16 1065369472, %v3376_v40 }
 0x9b0   : > { %v3380_v44 = vpop.eup %3379  ;;  %3389 = vrcp.bf16 %v2150_v48  ;;  %v2151_v45 = vadd.bf16 1065369472, %v3378_v41 }
 0x9b1   : > { %3391 = vrcp.bf16 %v2152_v42  ;;  %v2153_v46 = vadd.bf16 1065369472, %v3380_v44 }
 0x9b2   : > { %3393 = vrcp.bf16 %v2151_v45 }
 0x9b3   : > { %3395 = vrcp.bf16 %v2153_v46 }
 0x9b5   : > { %v3382_v49 = vpop.eup %3381 }
 0x9b6   : > { %v3384_v17 = vpop.eup %3383  ;;  %v2154_v52 = vadd.bf16 1065369472, %v3382_v49 }
 0x9b7   : > { %v3386_v53 = vpop.eup %3385  ;;  %v2156_v55 = vadd.bf16 1065369472, %v3384_v17 }
 0x9b8   : > { %v3388_v56 = vpop.eup %3387  ;;  %v2155_v57 = vadd.bf16 1065369472, %v3386_v53  ;;  %3397 = vrcp.bf16 %v2154_v52 }
 0x9b9   : > { %v2157_v47 = vadd.bf16 1065369472, %v3388_v56  ;;  %3399 = vrcp.bf16 %v2156_v55 }
 0x9ba   : > { %3401 = vrcp.bf16 %v2155_v57 }
 0x9bb   : > { %v3390_v20 = vpop.eup %3389  ;;  %3403 = vrcp.bf16 %v2157_v47 }
 0x9bc   : > { %v3392_v51 = vpop.eup %3391  ;;  %v2159_v23 = vmul.bf16 1065369472, %v3390_v20 }
 0x9bd   : > { %v3394_v58 = vpop.eup %3393  ;;  %v2163_v62 = vmul.bf16 1065369472, %v3392_v51 }
 0x9be   : > { %v3396_v54 = vpop.eup %3395  ;;  %v2161_v63 = vmul.bf16 1065369472, %v3394_v58  ;;  %v2174_v1 = vmul.bf16 %v2159_v23, %v4198_v60 }
 0x9bf   : > { %v2165_v59 = vmul.bf16 1065369472, %v3396_v54  ;;  %v2176_v2 = vmul.bf16 %v2163_v62, %v4200_v61 }
 0x9c0   : > { %v2175_v0 = vmul.bf16 %v2161_v63, %v4202_v19 }
 0x9c1   : > { %v2177_v43 = vmul.bf16 %v2165_v59, %v4204_v22 }
 0x9c2   : > { %2477 = vmatprep.mubr.bf16.mxu0 %v2175_v0 }
 0x9c3   : > { %v3398_v3 = vpop.eup %3397  ;;  %2526 = vmatprep.mubr.bf16.mxu1 %v2177_v43  ;;  %2478 = vmatmul.mubr.bf16.vlgmr.msra.gmra.mrb[36].mxu0 %v2174_v1 }
 0x9c4   : > { %v3400_v4 = vpop.eup %3399  ;;  %2527 = vmatmul.mubr.bf16.vlgmr.msra.gmra.mrb[28].mxu1 %v2176_v2  ;;  %v2167_v6 = vmul.bf16 1065369472, %v3398_v3 }
 0x9c5   : > { %v3402_v5 = vpop.eup %3401  ;;  %v2171_v9 = vmul.bf16 1065369472, %v3400_v4 }
 0x9c6   : > { %v3404_v7 = vpop.eup %3403  ;;  %v2169_v8 = vmul.bf16 1065369472, %v3402_v5  ;;  %v2178_v60 = vmul.bf16 %v2167_v6, %v4210_v24 }
 0x9c7   : > { %v2173_v10 = vmul.bf16 1065369472, %v3404_v7  ;;  %v2180_v61 = vmul.bf16 %v2171_v9, %v4212_v25 }
 0x9c8   : > { %v2179_v19 = vmul.bf16 %v2169_v8, %v2107_v26 }
 0x9c9   : > { %v2181_v11 = vmul.bf16 %v2173_v10, %v2109_v27 }
 0x9ca   : > { %2485 = vmatprep.mubr.bf16.mxu0 %v2179_v19 }
 0x9cb   : > { %2534 = vmatprep.mubr.bf16.mxu1 %v2181_v11  ;;  %2486 = vmatmul.mubr.bf16.gmra.mrb[40].mxu0 %v2178_v60 }
 0x9cc   : > { %2535 = vmatmul.mubr.bf16.gmra.mrb[32].mxu1 %v2180_v61 }
 0xa96   : > { %v2982_v22 = vpop.f32.mrb[36].mxu0 }
 0xa97   : > { %v3010_v12 = vpop.f32.mrb[28].mxu1  ;;  %v2983_v14 = vpop.f32.mrb[37].mxu0 }
 0xa98   : > { %v2984_v15 = vadd.f32 %v2983_v14, %v2982_v22  ;;  %v3011_v16 = vpop.f32.mrb[29].mxu1  ;;  %v2985_v18 = vpop.f32.mrb[38].mxu0 }
 0xa99   : > { %v3012_v21 = vadd.f32 %v3011_v16, %v3010_v12  ;;  %v3013_v26 = vpop.f32.mrb[30].mxu1  ;;  %v2986_v24 = vpop.f32.mrb[39].mxu0 }
 0xa9a   : > { %v2480_v27 = vadd.f32 %v2984_v15, %v2889_v13  ;;  %v2987_v28 = vadd.f32 %v2986_v24, %v2985_v18  ;;  %v3014_v25 = vpop.f32.mrb[31].mxu1 }
 0xa9b   : > { %v3015_v29 = vadd.f32 %v3014_v25, %v3013_v26 }
 0xa9c   : > { %v2529_v31 = vadd.f32 %v3012_v21, %v2480_v27  ;;  %v2483_v33 = vadd.f32 %v2987_v28, %v2889_v13 }
 0xa9e   : > { %v2543_v34 = vadd.f32 %v2529_v31, %v4078_v50  ;;  %v2532_v36 = vadd.f32 %v3015_v29, %v2483_v33  ;;  %v2988_v37 = vpop.f32.mrb[40].mxu0 }
 0xa9f   : > { %v3016_v38 = vpop.f32.mrb[32].mxu1  ;;  %v2989_v39 = vpop.f32.mrb[41].mxu0 }
 0xaa0   : > { %2547 = vst [vmem:[#allocation2] sm:$0xff] %v2543_v34  ;;  %v2544_v40 = vadd.f32 %v2532_v36, %v4080_v30  ;;  %v2990_v48 = vadd.f32 %v2989_v39, %v2988_v37  ;;  %v3017_v41 = vpop.f32.mrb[33].mxu1  ;;  %v2991_v42 = vpop.f32.mrb[42].mxu0  ;;  %2555 = vst [vmem:[%s3916_s5] sm:$0xff] (!%p2922_p0), %v2543_v34 }
 0xaa1   : > { %v3018_v44 = vadd.f32 %v3017_v41, %v3016_v38  ;;  %v3019_v45 = vpop.f32.mrb[34].mxu1  ;;  %v2992_v46 = vpop.f32.mrb[43].mxu0 }
 0xaa2   : > { %2548 = vst [vmem:[#allocation2 + $0x8] sm:$0xff] %v2544_v40  ;;  %v2488_v49 = vadd.f32 %v2990_v48, %v2889_v13  ;;  %v2993_v17 = vadd.f32 %v2992_v46, %v2991_v42  ;;  %v3020_v52 = vpop.f32.mrb[35].mxu1  ;;  %2556 = vst [vmem:[%s3916_s5 + $0x8] sm:$0xff] (!%p2922_p0), %v2544_v40 }
 0xaa3   : > { %v3021_v53 = vadd.f32 %v3020_v52, %v3019_v45 }
 0xaa4   : > { %v2537_v55 = vadd.f32 %v3018_v44, %v2488_v49  ;;  %v2491_v50 = vadd.f32 %v2993_v17, %v2889_v13  ;;  %2554 = sbr.rel (%p2922_p0) target bundleno = 2731 (0xaab), region = 92 }
 0xaa6   : > { %v2545_v56 = vadd.f32 %v2537_v55, %v4083_v32  ;;  %v2540_v57 = vadd.f32 %v3021_v53, %v2491_v50 }
 0xaa8   : > { %2549 = vst [vmem:[#allocation2 + $0x10] sm:$0xff] %v2545_v56  ;;  %v2546_v47 = vadd.f32 %v2540_v57, %v4087_v35  ;;  %2557 = vst [vmem:[%s3916_s5 + $0x10] sm:$0xff] (!%p2922_p0), %v2545_v56 }
 0xaaa   : > { %2550 = vst [vmem:[#allocation2 + $0x18] sm:$0xff] %v2546_v47  ;;  %2558 = vst [vmem:[%s3916_s5 + $0x18] sm:$0xff] (!%p2922_p0), %v2546_v47 }
 0xaab PF: > { %s4335_s30 = sld [smem:[#allocation15_spill]]  ;;  %s4336_s25 = sld [smem:[#allocation11_spill]] }
 0xaac   : > { %s4337_s26 = sld [smem:[#allocation12_spill]]  ;;  %s4338_s27 = sld [smem:[#allocation18_spill]] }
 0xaad   : > { %s4339_s28 = sld [smem:[#allocation13_spill]]  ;;  %s4340_s29 = sld [smem:[#allocation14_spill]] }
 0xaae   : > { %s4342_s14 = sld [smem:[#allocation17_spill]] }
 0xab1   : > { %s29_s15 = sadd.s32 1, %s4335_s30   ;;  %s4341_s30 = sld [smem:[#allocation16_spill]] }
 0xab2   : > { %p26_p4 = scmp.ge.s32.totalorder %s29_s15, 6  }
 0xab4   :  { %28 = sbr.rel (!%p26_p4) target bundleno = 20 (0x14), region = 174 }
 0xabb   :  { %2580 = vsyncpa [#allocation5], 1 }
 0xabc   :  { %2582 = vsyncpa [#allocation5 + $0x1], 1 }
 0xabd   :  { %2583 = vsyncpa [#allocation7], 1 }
 0xabe   :  { %2585 = vsyncpa [#allocation7 + $0x1], 1 }

</bundles_post_ra>
